<compile_context>
chip_gen: v6e
topology: v6e:2x2x1
jax: 0.10.0
libtpu: 0.0.40
codegen_flags: <defaults>
</compile_context>

<pallas_src>
import functools
import math

import jax
import jax.numpy as jnp
import numpy as np
from jax.experimental import pallas as pl
from jax.experimental.pallas import tpu as pltpu


def _double_conv_kernel(lane_ref, row_ref, col_ref, x_ref,
                        w1_ref, g1_ref, b1_ref,
                        w2_ref, g2_ref, b2_ref,
                        o_ref, taps_ref,
                        *, H, W, cin, cmid, cout, cp):
    """Fused (conv3x3 -> LayerNorm2d -> GELU) x 2 for one batch element.

    lane/row/col_ref: (1, P) int32   flattened index p, its row y and column x
    x_ref:            (1, cin, P)    input, channel-major, spatial flattened on lanes
    w*_ref:           (c_out, 9*cp)  packed conv weights (tap-major, channel blocks padded to cp)
    g*/b*_ref:        (c_out, 1)     LayerNorm2d affine params
    o_ref:            (1, cout, P)   output (lane-dense store)
    taps_ref:         (9*cp, P)      VMEM scratch holding the im2col tap matrix
    """
    P = H * W
    lane = lane_ref[...]
    row = row_ref[...]
    col = col_ref[...]

    # One-time probe of the hardware lane-rotate direction: rolled[p] is either
    # lane[(p-1)%P] or lane[(p+1)%P].  Selecting between the two rotations with this
    # (1, P) bool keeps the kernel correct under either rotate convention; the extra
    # rotate per tap is a cheap XLU op that does not touch the VPU/MXU slots.
    expected_fwd = jnp.where(lane == 0, P - 1, lane - 1)
    is_fwd = pltpu.roll(lane, 1, axis=1) == expected_fwd          # (1, P) bool

    def shift_flat(v, off):
        """Returns u with u[:, p] = v[:, p + off]; wrapped lanes are masked by the caller."""
        if off == 0:
            return v
        fwd = pltpu.roll(v, (-off) % P, axis=1)
        rev = pltpu.roll(v, off % P, axis=1)
        return jnp.where(is_fwd, fwd, rev)

    tap_offsets = [(dy, dx) for dy in (-1, 0, 1) for dx in (-1, 0, 1)]

    def conv_ln_gelu(act, c_in, w_ref, g_ref, b_ref, c_out):
        # act: (c_in, P) float32.  Build the 9-tap im2col matrix in VMEM, then ONE matmul.
        if c_in < cp:  # unused padded channel rows must be zero
            taps_ref[...] = jnp.zeros(taps_ref.shape, taps_ref.dtype)
        for t, (dy, dx) in enumerate(tap_offsets):
            tap = shift_flat(act, dy * W + dx)
            conds = []
            if dy == -1:
                conds.append(row >= 1)
            elif dy == 1:
                conds.append(row <= H - 2)
            if dx == -1:
                conds.append(col >= 1)
            elif dx == 1:
                conds.append(col <= W - 2)
            if conds:  # zero-padding semantics of the conv (also kills rotate wraparound)
                valid = conds[0]
                for m in conds[1:]:
                    valid = valid & m
                tap = jnp.where(valid, tap, 0.0)
            taps_ref[t * cp:t * cp + c_in, :] = tap.astype(taps_ref.dtype)

        # Single MXU matmul: (c_out, 9*cp) @ (9*cp, P) -> f32 accumulator.
        y = jnp.dot(w_ref[...], taps_ref[...], preferred_element_type=jnp.float32)

        # LayerNorm2d: normalize over channels at every spatial position (biased var, eps=1e-6).
        # The channel reduction is done as a 1xC matmul (MXU) rather than a cross-sublane reduce.
        ones_row = jnp.full((1, c_out), 1.0 / c_out, dtype=jnp.float32)
        mean = jnp.dot(ones_row, y, preferred_element_type=jnp.float32)        # (1, P)
        d = y - mean
        var = jnp.dot(ones_row, d * d, preferred_element_type=jnp.float32)     # (1, P)
        yn = d * jax.lax.rsqrt(var + 1e-6)
        yn = yn * g_ref[...] + b_ref[...]
        # Exact GELU (erf form) — matches nn.GELU() default (approximate='none').
        return 0.5 * yn * (1.0 + jax.lax.erf(yn * 0.7071067811865476))

    x = x_ref[0].astype(jnp.float32)                                    # (cin, P)
    mid = conv_ln_gelu(x, cin, w1_ref, g1_ref, b1_ref, cmid)            # stays on-chip
    out = conv_ln_gelu(mid, cmid, w2_ref, g2_ref, b2_ref, cout)
    o_ref[0] = out.astype(o_ref.dtype)                                  # (cout, P) lane-dense


def _pack_conv_weight(w_oihw, cp, dtype):
    """(Co, Ci, 3, 3) -> (Co, 9*cp): tap-major, channel block zero-padded Ci -> cp."""
    co, ci = w_oihw.shape[0], w_oihw.shape[1]
    w = jnp.transpose(w_oihw, (0, 2, 3, 1))                       # (co, 3, 3, ci)
    w = jnp.pad(w, ((0, 0), (0, 0), (0, 0), (0, cp - ci)))        # (co, 3, 3, cp)
    return w.reshape(co, 9 * cp).astype(dtype)


def double_conv(x_nchw, w1, g1, b1, w2, g2, b2, *, conv_dtype=jnp.float32):
    """DoubleConv.forward.  NCHW in / NCHW out, PyTorch OIHW conv weights.

    conv_dtype=jnp.bfloat16 feeds bf16 operands to the MXU (recommended on v5e/v6e);
    LayerNorm / GELU math is always f32.
    """
    B, cin, H, W = x_nchw.shape
    cmid = w1.shape[0]
    cout = w2.shape[0]
    P = H * W
    cp = ((max(cin, cmid) + 7) // 8) * 8       # channel block padded to a sublane multiple

    # Free reshape: NCHW is already channel-major, so no transpose / pad HBM copies.
    x_flat = x_nchw.reshape(B, cin, P)

    w1m = _pack_conv_weight(w1, cp, conv_dtype)
    w2m = _pack_conv_weight(w2, cp, conv_dtype)
    g1c = g1.reshape(cmid, 1).astype(jnp.float32)
    b1c = b1.reshape(cmid, 1).astype(jnp.float32)
    g2c = g2.reshape(cout, 1).astype(jnp.float32)
    b2c = b2.reshape(cout, 1).astype(jnp.float32)

    idx = jnp.arange(P, dtype=jnp.int32).reshape(1, P)
    lane = idx
    row = idx // W
    col = idx % W

    kernel = functools.partial(_double_conv_kernel, H=H, W=W,
                               cin=cin, cmid=cmid, cout=cout, cp=cp)

    out_flat = pl.pallas_call(
        kernel,
        out_shape=jax.ShapeDtypeStruct((B, cout, P), x_nchw.dtype),
        grid=(B,),
        in_specs=[
            pl.BlockSpec((1, P), lambda b: (0, 0)),             # lane ids
            pl.BlockSpec((1, P), lambda b: (0, 0)),             # row ids
            pl.BlockSpec((1, P), lambda b: (0, 0)),             # col ids
            pl.BlockSpec((1, cin, P), lambda b: (b, 0, 0)),     # input
            pl.BlockSpec((cmid, 9 * cp), lambda b: (0, 0)),     # conv1 weight
            pl.BlockSpec((cmid, 1), lambda b: (0, 0)),          # ln1 gamma
            pl.BlockSpec((cmid, 1), lambda b: (0, 0)),          # ln1 beta
            pl.BlockSpec((cout, 9 * cp), lambda b: (0, 0)),     # conv2 weight
            pl.BlockSpec((cout, 1), lambda b: (0, 0)),          # ln2 gamma
            pl.BlockSpec((cout, 1), lambda b: (0, 0)),          # ln2 beta
        ],
        out_specs=pl.BlockSpec((1, cout, P), lambda b: (b, 0, 0)),
        scratch_shapes=[pltpu.VMEM((9 * cp, P), conv_dtype)],
        compiler_params=pltpu.CompilerParams(dimension_semantics=("parallel",)),
    )(lane, row, col, x_flat, w1m, g1c, b1c, w2m, g2c, b2c)

    return out_flat.reshape(B, cout, H, W)


# ---------------- pure-JAX reference (for correctness check) ----------------
def _ref_stage(x_nchw, w_oihw, gamma, beta):
    y = jax.lax.conv_general_dilated(
        x_nchw, w_oihw, window_strides=(1, 1), padding=((1, 1), (1, 1)),
        dimension_numbers=("NCHW", "OIHW", "NCHW"),
        precision=jax.lax.Precision.HIGHEST)
    u = y.mean(axis=1, keepdims=True)
    s = ((y - u) ** 2).mean(axis=1, keepdims=True)
    yn = (y - u) / jnp.sqrt(s + 1e-6)
    yn = yn * gamma[None, :, None, None] + beta[None, :, None, None]
    return 0.5 * yn * (1.0 + jax.lax.erf(yn / jnp.sqrt(2.0)))


def _ref_double_conv(x, w1, g1, b1, w2, g2, b2):
    return _ref_stage(_ref_stage(x, w1, g1, b1), w2, g2, b2)


if __name__ == "__main__":
    # DoubleConv(in_channels=4, out_channels=8) => mid_channels = out_channels = 8
    B, Cin, H, W = 2, 4, 16, 16
    Cmid, Cout = 8, 8

    key = jax.random.PRNGKey(0)
    kx, kw1, kw2, kg1, kb1, kg2, kb2 = jax.random.split(key, 7)
    x = jax.random.normal(kx, (B, Cin, H, W), jnp.float32)

    # Conv weights in PyTorch OIHW layout.
    w1 = jax.random.normal(kw1, (Cmid, Cin, 3, 3), jnp.float32) / math.sqrt(Cin * 9)
    w2 = jax.random.normal(kw2, (Cout, Cmid, 3, 3), jnp.float32) / math.sqrt(Cmid * 9)

    # LayerNorm2d affine params (perturbed from the init defaults to exercise the affine).
    g1 = 1.0 + 0.2 * jax.random.normal(kg1, (Cmid,), jnp.float32)
    b1 = 0.1 * jax.random.normal(kb1, (Cmid,), jnp.float32)
    g2 = 1.0 + 0.2 * jax.random.normal(kg2, (Cout,), jnp.float32)
    b2 = 0.1 * jax.random.normal(kb2, (Cout,), jnp.float32)

    ref = _ref_double_conv(x, w1, g1, b1, w2, g2, b2)

    # f32 path: exact semantics of the PyTorch module.
    out = double_conv(x, w1, g1, b1, w2, g2, b2, conv_dtype=jnp.float32)
    out = jax.block_until_ready(out)
    assert out.shape == (B, Cout, H, W)
    np.testing.assert_allclose(np.asarray(out), np.asarray(ref), rtol=1e-4, atol=1e-4)

    # bf16-MXU path (v5e/v6e-friendly operands, f32 accumulate + f32 LN/GELU): loose check.
    out_bf = double_conv(x, w1, g1, b1, w2, g2, b2, conv_dtype=jnp.bfloat16)
    out_bf = jax.block_until_ready(out_bf)
    np.testing.assert_allclose(np.asarray(out_bf), np.asarray(ref), rtol=1e-1, atol=1e-1)

    print("KERNEL_OK")
</pallas_src>

<mosaic_0001>
module attributes {stable_mosaic.version = 11 : i64} {
  func.func @_double_conv_kernel(%arg0: i32, %arg1: memref<1x256xi32, #tpu.memory_space<vmem>>, %arg2: memref<1x256xi32, #tpu.memory_space<vmem>>, %arg3: memref<1x256xi32, #tpu.memory_space<vmem>>, %arg4: memref<1x4x256xf32, #tpu.memory_space<vmem>>, %arg5: memref<8x72xf32, #tpu.memory_space<vmem>>, %arg6: memref<8x1xf32, #tpu.memory_space<vmem>>, %arg7: memref<8x1xf32, #tpu.memory_space<vmem>>, %arg8: memref<8x72xf32, #tpu.memory_space<vmem>>, %arg9: memref<8x1xf32, #tpu.memory_space<vmem>>, %arg10: memref<8x1xf32, #tpu.memory_space<vmem>>, %arg11: memref<1x8x256xf32, #tpu.memory_space<vmem>>, %arg12: memref<72x256xf32, #tpu.memory_space<vmem>>) attributes {dimension_semantics = [#tpu.dimension_semantics<parallel>], iteration_bounds = array<i64: 2>, scalar_prefetch = 0 : i64, scratch_operands = 1 : i64, tpu.core_type = #tpu.core_type<tc>, window_params = [{pipeline_mode = #tpu.pipeline_mode<synchronous>, transform_indices = @transform_0, window_bounds = array<i64: 1, 256>}, {pipeline_mode = #tpu.pipeline_mode<synchronous>, transform_indices = @transform_1, window_bounds = array<i64: 1, 256>}, {pipeline_mode = #tpu.pipeline_mode<synchronous>, transform_indices = @transform_2, window_bounds = array<i64: 1, 256>}, {transform_indices = @transform_3, window_bounds = array<i64: 1, 4, 256>}, {pipeline_mode = #tpu.pipeline_mode<synchronous>, transform_indices = @transform_4, window_bounds = array<i64: 8, 72>}, {pipeline_mode = #tpu.pipeline_mode<synchronous>, transform_indices = @transform_5, window_bounds = array<i64: 8, 1>}, {pipeline_mode = #tpu.pipeline_mode<synchronous>, transform_indices = @transform_6, window_bounds = array<i64: 8, 1>}, {pipeline_mode = #tpu.pipeline_mode<synchronous>, transform_indices = @transform_7, window_bounds = array<i64: 8, 72>}, {pipeline_mode = #tpu.pipeline_mode<synchronous>, transform_indices = @transform_8, window_bounds = array<i64: 8, 1>}, {pipeline_mode = #tpu.pipeline_mode<synchronous>, transform_indices = @transform_9, window_bounds = array<i64: 8, 1>}, {transform_indices = @transform_10, window_bounds = array<i64: 1, 8, 256>}]} {
    %c0 = arith.constant 0 : index
    %c0_0 = arith.constant 0 : index
    %0 = vector.load %arg1[%c0, %c0_0] : memref<1x256xi32, #tpu.memory_space<vmem>>, vector<1x256xi32>
    %c0_1 = arith.constant 0 : index
    %c0_2 = arith.constant 0 : index
    %1 = vector.load %arg2[%c0_1, %c0_2] : memref<1x256xi32, #tpu.memory_space<vmem>>, vector<1x256xi32>
    %c0_3 = arith.constant 0 : index
    %c0_4 = arith.constant 0 : index
    %2 = vector.load %arg3[%c0_3, %c0_4] : memref<1x256xi32, #tpu.memory_space<vmem>>, vector<1x256xi32>
    %c0_i32 = arith.constant 0 : i32
    %3 = vector.broadcast %c0_i32 : i32 to vector<1x256xi32>
    %4 = arith.cmpi eq, %0, %3 : vector<1x256xi32>
    %c1_i32 = arith.constant 1 : i32
    %5 = vector.broadcast %c1_i32 : i32 to vector<1x256xi32>
    %6 = arith.subi %0, %5 : vector<1x256xi32>
    %c255_i32 = arith.constant 255 : i32
    %7 = vector.broadcast %c255_i32 : i32 to vector<1x256xi32>
    %8 = arith.select %4, %7, %6 : vector<1x256xi1>, vector<1x256xi32>
    %c1_i32_5 = arith.constant 1 : i32
    %9 = tpu.dynamic_rotate %0 by %c1_i32_5 dim 1 : vector<1x256xi32>, i32 -> vector<1x256xi32>
    %10 = arith.cmpi eq, %9, %8 : vector<1x256xi32>
    %c0_6 = arith.constant 0 : index
    %c0_7 = arith.constant 0 : index
    %c0_8 = arith.constant 0 : index
    %11 = vector.load %arg4[%c0_6, %c0_7, %c0_8] : memref<1x4x256xf32, #tpu.memory_space<vmem>>, vector<1x4x256xf32>
    %12 = vector.shape_cast %11 : vector<1x4x256xf32> to vector<4x256xf32>
    %cst = arith.constant 0.000000e+00 : f32
    %13 = vector.broadcast %cst : f32 to vector<72x256xf32>
    %c0_9 = arith.constant 0 : index
    %c0_10 = arith.constant 0 : index
    %14 = vector.load %arg12[%c0_9, %c0_10] : memref<72x256xf32, #tpu.memory_space<vmem>>, vector<72x256xf32>
    tpu.vector_store %arg12[%c0_9, %c0_10], %13 {strides = array<i32>} : memref<72x256xf32, #tpu.memory_space<vmem>>, vector<72x256xf32>,
    %c17_i32 = arith.constant 17 : i32
    %15 = tpu.dynamic_rotate %12 by %c17_i32 dim 1 : vector<4x256xf32>, i32 -> vector<4x256xf32>
    %c239_i32 = arith.constant 239 : i32
    %16 = tpu.dynamic_rotate %12 by %c239_i32 dim 1 : vector<4x256xf32>, i32 -> vector<4x256xf32>
    %17 = vector.shape_cast %10 : vector<1x256xi1> to vector<1x256xi1>
    %18 = vector.broadcast %17 : vector<1x256xi1> to vector<4x256xi1>
    %19 = arith.select %18, %15, %16 : vector<4x256xi1>, vector<4x256xf32>
    %c1_i32_11 = arith.constant 1 : i32
    %20 = vector.broadcast %c1_i32_11 : i32 to vector<1x256xi32>
    %21 = arith.cmpi sge, %1, %20 : vector<1x256xi32>
    %c1_i32_12 = arith.constant 1 : i32
    %22 = vector.broadcast %c1_i32_12 : i32 to vector<1x256xi32>
    %23 = arith.cmpi sge, %2, %22 : vector<1x256xi32>
    %24 = arith.andi %21, %23 : vector<1x256xi1>
    %cst_13 = arith.constant 0.000000e+00 : f32
    %25 = vector.shape_cast %24 : vector<1x256xi1> to vector<1x256xi1>
    %26 = vector.broadcast %25 : vector<1x256xi1> to vector<4x256xi1>
    %27 = vector.broadcast %cst_13 : f32 to vector<4x256xf32>
    %28 = arith.select %26, %19, %27 : vector<4x256xi1>, vector<4x256xf32>
    %c0_14 = arith.constant 0 : index
    %c0_15 = arith.constant 0 : index
    %29 = vector.load %arg12[%c0_14, %c0_15] : memref<72x256xf32, #tpu.memory_space<vmem>>, vector<4x256xf32>
    tpu.vector_store %arg12[%c0_14, %c0_15], %28 {strides = array<i32>} : memref<72x256xf32, #tpu.memory_space<vmem>>, vector<4x256xf32>,
    %c16_i32 = arith.constant 16 : i32
    %30 = tpu.dynamic_rotate %12 by %c16_i32 dim 1 : vector<4x256xf32>, i32 -> vector<4x256xf32>
    %c240_i32 = arith.constant 240 : i32
    %31 = tpu.dynamic_rotate %12 by %c240_i32 dim 1 : vector<4x256xf32>, i32 -> vector<4x256xf32>
    %32 = vector.shape_cast %10 : vector<1x256xi1> to vector<1x256xi1>
    %33 = vector.broadcast %32 : vector<1x256xi1> to vector<4x256xi1>
    %34 = arith.select %33, %30, %31 : vector<4x256xi1>, vector<4x256xf32>
    %c1_i32_16 = arith.constant 1 : i32
    %35 = vector.broadcast %c1_i32_16 : i32 to vector<1x256xi32>
    %36 = arith.cmpi sge, %1, %35 : vector<1x256xi32>
    %cst_17 = arith.constant 0.000000e+00 : f32
    %37 = vector.shape_cast %36 : vector<1x256xi1> to vector<1x256xi1>
    %38 = vector.broadcast %37 : vector<1x256xi1> to vector<4x256xi1>
    %39 = vector.broadcast %cst_17 : f32 to vector<4x256xf32>
    %40 = arith.select %38, %34, %39 : vector<4x256xi1>, vector<4x256xf32>
    %c8 = arith.constant 8 : index
    %c0_18 = arith.constant 0 : index
    %41 = vector.load %arg12[%c8, %c0_18] : memref<72x256xf32, #tpu.memory_space<vmem>>, vector<4x256xf32>
    tpu.vector_store %arg12[%c8, %c0_18], %40 {strides = array<i32>} : memref<72x256xf32, #tpu.memory_space<vmem>>, vector<4x256xf32>,
    %c15_i32 = arith.constant 15 : i32
    %42 = tpu.dynamic_rotate %12 by %c15_i32 dim 1 : vector<4x256xf32>, i32 -> vector<4x256xf32>
    %c241_i32 = arith.constant 241 : i32
    %43 = tpu.dynamic_rotate %12 by %c241_i32 dim 1 : vector<4x256xf32>, i32 -> vector<4x256xf32>
    %44 = vector.shape_cast %10 : vector<1x256xi1> to vector<1x256xi1>
    %45 = vector.broadcast %44 : vector<1x256xi1> to vector<4x256xi1>
    %46 = arith.select %45, %42, %43 : vector<4x256xi1>, vector<4x256xf32>
    %c1_i32_19 = arith.constant 1 : i32
    %47 = vector.broadcast %c1_i32_19 : i32 to vector<1x256xi32>
    %48 = arith.cmpi sge, %1, %47 : vector<1x256xi32>
    %c14_i32 = arith.constant 14 : i32
    %49 = vector.broadcast %c14_i32 : i32 to vector<1x256xi32>
    %50 = arith.cmpi sle, %2, %49 : vector<1x256xi32>
    %51 = arith.andi %48, %50 : vector<1x256xi1>
    %cst_20 = arith.constant 0.000000e+00 : f32
    %52 = vector.shape_cast %51 : vector<1x256xi1> to vector<1x256xi1>
    %53 = vector.broadcast %52 : vector<1x256xi1> to vector<4x256xi1>
    %54 = vector.broadcast %cst_20 : f32 to vector<4x256xf32>
    %55 = arith.select %53, %46, %54 : vector<4x256xi1>, vector<4x256xf32>
    %c16 = arith.constant 16 : index
    %c0_21 = arith.constant 0 : index
    %56 = vector.load %arg12[%c16, %c0_21] : memref<72x256xf32, #tpu.memory_space<vmem>>, vector<4x256xf32>
    tpu.vector_store %arg12[%c16, %c0_21], %55 {strides = array<i32>} : memref<72x256xf32, #tpu.memory_space<vmem>>, vector<4x256xf32>,
    %c1_i32_22 = arith.constant 1 : i32
    %57 = tpu.dynamic_rotate %12 by %c1_i32_22 dim 1 : vector<4x256xf32>, i32 -> vector<4x256xf32>
    %c255_i32_23 = arith.constant 255 : i32
    %58 = tpu.dynamic_rotate %12 by %c255_i32_23 dim 1 : vector<4x256xf32>, i32 -> vector<4x256xf32>
    %59 = vector.shape_cast %10 : vector<1x256xi1> to vector<1x256xi1>
    %60 = vector.broadcast %59 : vector<1x256xi1> to vector<4x256xi1>
    %61 = arith.select %60, %57, %58 : vector<4x256xi1>, vector<4x256xf32>
    %c1_i32_24 = arith.constant 1 : i32
    %62 = vector.broadcast %c1_i32_24 : i32 to vector<1x256xi32>
    %63 = arith.cmpi sge, %2, %62 : vector<1x256xi32>
    %cst_25 = arith.constant 0.000000e+00 : f32
    %64 = vector.shape_cast %63 : vector<1x256xi1> to vector<1x256xi1>
    %65 = vector.broadcast %64 : vector<1x256xi1> to vector<4x256xi1>
    %66 = vector.broadcast %cst_25 : f32 to vector<4x256xf32>
    %67 = arith.select %65, %61, %66 : vector<4x256xi1>, vector<4x256xf32>
    %c24 = arith.constant 24 : index
    %c0_26 = arith.constant 0 : index
    %68 = vector.load %arg12[%c24, %c0_26] : memref<72x256xf32, #tpu.memory_space<vmem>>, vector<4x256xf32>
    tpu.vector_store %arg12[%c24, %c0_26], %67 {strides = array<i32>} : memref<72x256xf32, #tpu.memory_space<vmem>>, vector<4x256xf32>,
    %c32 = arith.constant 32 : index
    %c0_27 = arith.constant 0 : index
    %69 = vector.load %arg12[%c32, %c0_27] : memref<72x256xf32, #tpu.memory_space<vmem>>, vector<4x256xf32>
    tpu.vector_store %arg12[%c32, %c0_27], %12 {strides = array<i32>} : memref<72x256xf32, #tpu.memory_space<vmem>>, vector<4x256xf32>,
    %c255_i32_28 = arith.constant 255 : i32
    %70 = tpu.dynamic_rotate %12 by %c255_i32_28 dim 1 : vector<4x256xf32>, i32 -> vector<4x256xf32>
    %c1_i32_29 = arith.constant 1 : i32
    %71 = tpu.dynamic_rotate %12 by %c1_i32_29 dim 1 : vector<4x256xf32>, i32 -> vector<4x256xf32>
    %72 = vector.shape_cast %10 : vector<1x256xi1> to vector<1x256xi1>
    %73 = vector.broadcast %72 : vector<1x256xi1> to vector<4x256xi1>
    %74 = arith.select %73, %70, %71 : vector<4x256xi1>, vector<4x256xf32>
    %c14_i32_30 = arith.constant 14 : i32
    %75 = vector.broadcast %c14_i32_30 : i32 to vector<1x256xi32>
    %76 = arith.cmpi sle, %2, %75 : vector<1x256xi32>
    %cst_31 = arith.constant 0.000000e+00 : f32
    %77 = vector.shape_cast %76 : vector<1x256xi1> to vector<1x256xi1>
    %78 = vector.broadcast %77 : vector<1x256xi1> to vector<4x256xi1>
    %79 = vector.broadcast %cst_31 : f32 to vector<4x256xf32>
    %80 = arith.select %78, %74, %79 : vector<4x256xi1>, vector<4x256xf32>
    %c40 = arith.constant 40 : index
    %c0_32 = arith.constant 0 : index
    %81 = vector.load %arg12[%c40, %c0_32] : memref<72x256xf32, #tpu.memory_space<vmem>>, vector<4x256xf32>
    tpu.vector_store %arg12[%c40, %c0_32], %80 {strides = array<i32>} : memref<72x256xf32, #tpu.memory_space<vmem>>, vector<4x256xf32>,
    %c241_i32_33 = arith.constant 241 : i32
    %82 = tpu.dynamic_rotate %12 by %c241_i32_33 dim 1 : vector<4x256xf32>, i32 -> vector<4x256xf32>
    %c15_i32_34 = arith.constant 15 : i32
    %83 = tpu.dynamic_rotate %12 by %c15_i32_34 dim 1 : vector<4x256xf32>, i32 -> vector<4x256xf32>
    %84 = vector.shape_cast %10 : vector<1x256xi1> to vector<1x256xi1>
    %85 = vector.broadcast %84 : vector<1x256xi1> to vector<4x256xi1>
    %86 = arith.select %85, %82, %83 : vector<4x256xi1>, vector<4x256xf32>
    %c14_i32_35 = arith.constant 14 : i32
    %87 = vector.broadcast %c14_i32_35 : i32 to vector<1x256xi32>
    %88 = arith.cmpi sle, %1, %87 : vector<1x256xi32>
    %c1_i32_36 = arith.constant 1 : i32
    %89 = vector.broadcast %c1_i32_36 : i32 to vector<1x256xi32>
    %90 = arith.cmpi sge, %2, %89 : vector<1x256xi32>
    %91 = arith.andi %88, %90 : vector<1x256xi1>
    %cst_37 = arith.constant 0.000000e+00 : f32
    %92 = vector.shape_cast %91 : vector<1x256xi1> to vector<1x256xi1>
    %93 = vector.broadcast %92 : vector<1x256xi1> to vector<4x256xi1>
    %94 = vector.broadcast %cst_37 : f32 to vector<4x256xf32>
    %95 = arith.select %93, %86, %94 : vector<4x256xi1>, vector<4x256xf32>
    %c48 = arith.constant 48 : index
    %c0_38 = arith.constant 0 : index
    %96 = vector.load %arg12[%c48, %c0_38] : memref<72x256xf32, #tpu.memory_space<vmem>>, vector<4x256xf32>
    tpu.vector_store %arg12[%c48, %c0_38], %95 {strides = array<i32>} : memref<72x256xf32, #tpu.memory_space<vmem>>, vector<4x256xf32>,
    %c240_i32_39 = arith.constant 240 : i32
    %97 = tpu.dynamic_rotate %12 by %c240_i32_39 dim 1 : vector<4x256xf32>, i32 -> vector<4x256xf32>
    %c16_i32_40 = arith.constant 16 : i32
    %98 = tpu.dynamic_rotate %12 by %c16_i32_40 dim 1 : vector<4x256xf32>, i32 -> vector<4x256xf32>
    %99 = vector.shape_cast %10 : vector<1x256xi1> to vector<1x256xi1>
    %100 = vector.broadcast %99 : vector<1x256xi1> to vector<4x256xi1>
    %101 = arith.select %100, %97, %98 : vector<4x256xi1>, vector<4x256xf32>
    %c14_i32_41 = arith.constant 14 : i32
    %102 = vector.broadcast %c14_i32_41 : i32 to vector<1x256xi32>
    %103 = arith.cmpi sle, %1, %102 : vector<1x256xi32>
    %cst_42 = arith.constant 0.000000e+00 : f32
    %104 = vector.shape_cast %103 : vector<1x256xi1> to vector<1x256xi1>
    %105 = vector.broadcast %104 : vector<1x256xi1> to vector<4x256xi1>
    %106 = vector.broadcast %cst_42 : f32 to vector<4x256xf32>
    %107 = arith.select %105, %101, %106 : vector<4x256xi1>, vector<4x256xf32>
    %c56 = arith.constant 56 : index
    %c0_43 = arith.constant 0 : index
    %108 = vector.load %arg12[%c56, %c0_43] : memref<72x256xf32, #tpu.memory_space<vmem>>, vector<4x256xf32>
    tpu.vector_store %arg12[%c56, %c0_43], %107 {strides = array<i32>} : memref<72x256xf32, #tpu.memory_space<vmem>>, vector<4x256xf32>,
    %c239_i32_44 = arith.constant 239 : i32
    %109 = tpu.dynamic_rotate %12 by %c239_i32_44 dim 1 : vector<4x256xf32>, i32 -> vector<4x256xf32>
    %c17_i32_45 = arith.constant 17 : i32
    %110 = tpu.dynamic_rotate %12 by %c17_i32_45 dim 1 : vector<4x256xf32>, i32 -> vector<4x256xf32>
    %111 = vector.shape_cast %10 : vector<1x256xi1> to vector<1x256xi1>
    %112 = vector.broadcast %111 : vector<1x256xi1> to vector<4x256xi1>
    %113 = arith.select %112, %109, %110 : vector<4x256xi1>, vector<4x256xf32>
    %c14_i32_46 = arith.constant 14 : i32
    %114 = vector.broadcast %c14_i32_46 : i32 to vector<1x256xi32>
    %115 = arith.cmpi sle, %1, %114 : vector<1x256xi32>
    %c14_i32_47 = arith.constant 14 : i32
    %116 = vector.broadcast %c14_i32_47 : i32 to vector<1x256xi32>
    %117 = arith.cmpi sle, %2, %116 : vector<1x256xi32>
    %118 = arith.andi %115, %117 : vector<1x256xi1>
    %cst_48 = arith.constant 0.000000e+00 : f32
    %119 = vector.shape_cast %118 : vector<1x256xi1> to vector<1x256xi1>
    %120 = vector.broadcast %119 : vector<1x256xi1> to vector<4x256xi1>
    %121 = vector.broadcast %cst_48 : f32 to vector<4x256xf32>
    %122 = arith.select %120, %113, %121 : vector<4x256xi1>, vector<4x256xf32>
    %c64 = arith.constant 64 : index
    %c0_49 = arith.constant 0 : index
    %123 = vector.load %arg12[%c64, %c0_49] : memref<72x256xf32, #tpu.memory_space<vmem>>, vector<4x256xf32>
    tpu.vector_store %arg12[%c64, %c0_49], %122 {strides = array<i32>} : memref<72x256xf32, #tpu.memory_space<vmem>>, vector<4x256xf32>,
    %c0_50 = arith.constant 0 : index
    %c0_51 = arith.constant 0 : index
    %124 = vector.load %arg5[%c0_50, %c0_51] : memref<8x72xf32, #tpu.memory_space<vmem>>, vector<8x72xf32>
    %c0_52 = arith.constant 0 : index
    %c0_53 = arith.constant 0 : index
    %125 = vector.load %arg12[%c0_52, %c0_53] : memref<72x256xf32, #tpu.memory_space<vmem>>, vector<72x256xf32>
    %cst_54 = arith.constant dense<0.000000e+00> : vector<8x256xf32>
    %126 = tpu.matmul %124, %125, %cst_54 {dimension_numbers = #tpu.dot_dimension_numbers<[1], [0], [0], [1], [0, 0, 1, 1], [], []>} : vector<8x72xf32>, vector<72x256xf32>, vector<8x256xf32> -> vector<8x256xf32>
    %cst_55 = arith.constant 1.250000e-01 : f32
    %127 = vector.broadcast %cst_55 : f32 to vector<1x8xf32>
    %cst_56 = arith.constant dense<0.000000e+00> : vector<1x256xf32>
    %128 = tpu.matmul %127, %126, %cst_56 {dimension_numbers = #tpu.dot_dimension_numbers<[1], [0], [0], [1], [0, 0, 1, 1], [], []>} : vector<1x8xf32>, vector<8x256xf32>, vector<1x256xf32> -> vector<1x256xf32>
    %129 = vector.broadcast %128 : vector<1x256xf32> to vector<8x256xf32>
    %130 = arith.subf %126, %129 : vector<8x256xf32>
    %131 = arith.mulf %130, %130 : vector<8x256xf32>
    %cst_57 = arith.constant dense<0.000000e+00> : vector<1x256xf32>
    %132 = tpu.matmul %127, %131, %cst_57 {dimension_numbers = #tpu.dot_dimension_numbers<[1], [0], [0], [1], [0, 0, 1, 1], [], []>} : vector<1x8xf32>, vector<8x256xf32>, vector<1x256xf32> -> vector<1x256xf32>
    %cst_58 = arith.constant 9.99999997E-7 : f32
    %133 = vector.broadcast %cst_58 : f32 to vector<1x256xf32>
    %134 = arith.addf %132, %133 : vector<1x256xf32>
    %135 = math.rsqrt %134 : vector<1x256xf32>
    %136 = vector.broadcast %135 : vector<1x256xf32> to vector<8x256xf32>
    %137 = arith.mulf %130, %136 : vector<8x256xf32>
    %c0_59 = arith.constant 0 : index
    %c0_60 = arith.constant 0 : index
    %138 = vector.load %arg6[%c0_59, %c0_60] : memref<8x1xf32, #tpu.memory_space<vmem>>, vector<8x1xf32>
    %139 = vector.broadcast %138 : vector<8x1xf32> to vector<8x256xf32>
    %140 = arith.mulf %137, %139 : vector<8x256xf32>
    %c0_61 = arith.constant 0 : index
    %c0_62 = arith.constant 0 : index
    %141 = vector.load %arg7[%c0_61, %c0_62] : memref<8x1xf32, #tpu.memory_space<vmem>>, vector<8x1xf32>
    %142 = vector.broadcast %141 : vector<8x1xf32> to vector<8x256xf32>
    %143 = arith.addf %140, %142 : vector<8x256xf32>
    %cst_63 = arith.constant 5.000000e-01 : f32
    %144 = vector.broadcast %cst_63 : f32 to vector<8x256xf32>
    %145 = arith.mulf %144, %143 : vector<8x256xf32>
    %cst_64 = arith.constant 0.707106769 : f32
    %146 = vector.broadcast %cst_64 : f32 to vector<8x256xf32>
    %147 = arith.mulf %143, %146 : vector<8x256xf32>
    %148 = math.erf %147 : vector<8x256xf32>
    %cst_65 = arith.constant 1.000000e+00 : f32
    %149 = vector.broadcast %cst_65 : f32 to vector<8x256xf32>
    %150 = arith.addf %149, %148 : vector<8x256xf32>
    %151 = arith.mulf %145, %150 : vector<8x256xf32>
    %c17_i32_66 = arith.constant 17 : i32
    %152 = tpu.dynamic_rotate %151 by %c17_i32_66 dim 1 : vector<8x256xf32>, i32 -> vector<8x256xf32>
    %c239_i32_67 = arith.constant 239 : i32
    %153 = tpu.dynamic_rotate %151 by %c239_i32_67 dim 1 : vector<8x256xf32>, i32 -> vector<8x256xf32>
    %154 = vector.shape_cast %10 : vector<1x256xi1> to vector<1x256xi1>
    %155 = vector.broadcast %154 : vector<1x256xi1> to vector<8x256xi1>
    %156 = arith.select %155, %152, %153 : vector<8x256xi1>, vector<8x256xf32>
    %c1_i32_68 = arith.constant 1 : i32
    %157 = vector.broadcast %c1_i32_68 : i32 to vector<1x256xi32>
    %158 = arith.cmpi sge, %1, %157 : vector<1x256xi32>
    %c1_i32_69 = arith.constant 1 : i32
    %159 = vector.broadcast %c1_i32_69 : i32 to vector<1x256xi32>
    %160 = arith.cmpi sge, %2, %159 : vector<1x256xi32>
    %161 = arith.andi %158, %160 : vector<1x256xi1>
    %cst_70 = arith.constant 0.000000e+00 : f32
    %162 = vector.shape_cast %161 : vector<1x256xi1> to vector<1x256xi1>
    %163 = vector.broadcast %162 : vector<1x256xi1> to vector<8x256xi1>
    %164 = vector.broadcast %cst_70 : f32 to vector<8x256xf32>
    %165 = arith.select %163, %156, %164 : vector<8x256xi1>, vector<8x256xf32>
    %c0_71 = arith.constant 0 : index
    %c0_72 = arith.constant 0 : index
    %166 = vector.load %arg12[%c0_71, %c0_72] : memref<72x256xf32, #tpu.memory_space<vmem>>, vector<8x256xf32>
    tpu.vector_store %arg12[%c0_71, %c0_72], %165 {strides = array<i32>} : memref<72x256xf32, #tpu.memory_space<vmem>>, vector<8x256xf32>,
    %c16_i32_73 = arith.constant 16 : i32
    %167 = tpu.dynamic_rotate %151 by %c16_i32_73 dim 1 : vector<8x256xf32>, i32 -> vector<8x256xf32>
    %c240_i32_74 = arith.constant 240 : i32
    %168 = tpu.dynamic_rotate %151 by %c240_i32_74 dim 1 : vector<8x256xf32>, i32 -> vector<8x256xf32>
    %169 = vector.shape_cast %10 : vector<1x256xi1> to vector<1x256xi1>
    %170 = vector.broadcast %169 : vector<1x256xi1> to vector<8x256xi1>
    %171 = arith.select %170, %167, %168 : vector<8x256xi1>, vector<8x256xf32>
    %c1_i32_75 = arith.constant 1 : i32
    %172 = vector.broadcast %c1_i32_75 : i32 to vector<1x256xi32>
    %173 = arith.cmpi sge, %1, %172 : vector<1x256xi32>
    %cst_76 = arith.constant 0.000000e+00 : f32
    %174 = vector.shape_cast %173 : vector<1x256xi1> to vector<1x256xi1>
    %175 = vector.broadcast %174 : vector<1x256xi1> to vector<8x256xi1>
    %176 = vector.broadcast %cst_76 : f32 to vector<8x256xf32>
    %177 = arith.select %175, %171, %176 : vector<8x256xi1>, vector<8x256xf32>
    %c8_77 = arith.constant 8 : index
    %c0_78 = arith.constant 0 : index
    %178 = vector.load %arg12[%c8_77, %c0_78] : memref<72x256xf32, #tpu.memory_space<vmem>>, vector<8x256xf32>
    tpu.vector_store %arg12[%c8_77, %c0_78], %177 {strides = array<i32>} : memref<72x256xf32, #tpu.memory_space<vmem>>, vector<8x256xf32>,
    %c15_i32_79 = arith.constant 15 : i32
    %179 = tpu.dynamic_rotate %151 by %c15_i32_79 dim 1 : vector<8x256xf32>, i32 -> vector<8x256xf32>
    %c241_i32_80 = arith.constant 241 : i32
    %180 = tpu.dynamic_rotate %151 by %c241_i32_80 dim 1 : vector<8x256xf32>, i32 -> vector<8x256xf32>
    %181 = vector.shape_cast %10 : vector<1x256xi1> to vector<1x256xi1>
    %182 = vector.broadcast %181 : vector<1x256xi1> to vector<8x256xi1>
    %183 = arith.select %182, %179, %180 : vector<8x256xi1>, vector<8x256xf32>
    %c1_i32_81 = arith.constant 1 : i32
    %184 = vector.broadcast %c1_i32_81 : i32 to vector<1x256xi32>
    %185 = arith.cmpi sge, %1, %184 : vector<1x256xi32>
    %c14_i32_82 = arith.constant 14 : i32
    %186 = vector.broadcast %c14_i32_82 : i32 to vector<1x256xi32>
    %187 = arith.cmpi sle, %2, %186 : vector<1x256xi32>
    %188 = arith.andi %185, %187 : vector<1x256xi1>
    %cst_83 = arith.constant 0.000000e+00 : f32
    %189 = vector.shape_cast %188 : vector<1x256xi1> to vector<1x256xi1>
    %190 = vector.broadcast %189 : vector<1x256xi1> to vector<8x256xi1>
    %191 = vector.broadcast %cst_83 : f32 to vector<8x256xf32>
    %192 = arith.select %190, %183, %191 : vector<8x256xi1>, vector<8x256xf32>
    %c16_84 = arith.constant 16 : index
    %c0_85 = arith.constant 0 : index
    %193 = vector.load %arg12[%c16_84, %c0_85] : memref<72x256xf32, #tpu.memory_space<vmem>>, vector<8x256xf32>
    tpu.vector_store %arg12[%c16_84, %c0_85], %192 {strides = array<i32>} : memref<72x256xf32, #tpu.memory_space<vmem>>, vector<8x256xf32>,
    %c1_i32_86 = arith.constant 1 : i32
    %194 = tpu.dynamic_rotate %151 by %c1_i32_86 dim 1 : vector<8x256xf32>, i32 -> vector<8x256xf32>
    %c255_i32_87 = arith.constant 255 : i32
    %195 = tpu.dynamic_rotate %151 by %c255_i32_87 dim 1 : vector<8x256xf32>, i32 -> vector<8x256xf32>
    %196 = vector.shape_cast %10 : vector<1x256xi1> to vector<1x256xi1>
    %197 = vector.broadcast %196 : vector<1x256xi1> to vector<8x256xi1>
    %198 = arith.select %197, %194, %195 : vector<8x256xi1>, vector<8x256xf32>
    %c1_i32_88 = arith.constant 1 : i32
    %199 = vector.broadcast %c1_i32_88 : i32 to vector<1x256xi32>
    %200 = arith.cmpi sge, %2, %199 : vector<1x256xi32>
    %cst_89 = arith.constant 0.000000e+00 : f32
    %201 = vector.shape_cast %200 : vector<1x256xi1> to vector<1x256xi1>
    %202 = vector.broadcast %201 : vector<1x256xi1> to vector<8x256xi1>
    %203 = vector.broadcast %cst_89 : f32 to vector<8x256xf32>
    %204 = arith.select %202, %198, %203 : vector<8x256xi1>, vector<8x256xf32>
    %c24_90 = arith.constant 24 : index
    %c0_91 = arith.constant 0 : index
    %205 = vector.load %arg12[%c24_90, %c0_91] : memref<72x256xf32, #tpu.memory_space<vmem>>, vector<8x256xf32>
    tpu.vector_store %arg12[%c24_90, %c0_91], %204 {strides = array<i32>} : memref<72x256xf32, #tpu.memory_space<vmem>>, vector<8x256xf32>,
    %c32_92 = arith.constant 32 : index
    %c0_93 = arith.constant 0 : index
    %206 = vector.load %arg12[%c32_92, %c0_93] : memref<72x256xf32, #tpu.memory_space<vmem>>, vector<8x256xf32>
    tpu.vector_store %arg12[%c32_92, %c0_93], %151 {strides = array<i32>} : memref<72x256xf32, #tpu.memory_space<vmem>>, vector<8x256xf32>,
    %c255_i32_94 = arith.constant 255 : i32
    %207 = tpu.dynamic_rotate %151 by %c255_i32_94 dim 1 : vector<8x256xf32>, i32 -> vector<8x256xf32>
    %c1_i32_95 = arith.constant 1 : i32
    %208 = tpu.dynamic_rotate %151 by %c1_i32_95 dim 1 : vector<8x256xf32>, i32 -> vector<8x256xf32>
    %209 = vector.shape_cast %10 : vector<1x256xi1> to vector<1x256xi1>
    %210 = vector.broadcast %209 : vector<1x256xi1> to vector<8x256xi1>
    %211 = arith.select %210, %207, %208 : vector<8x256xi1>, vector<8x256xf32>
    %c14_i32_96 = arith.constant 14 : i32
    %212 = vector.broadcast %c14_i32_96 : i32 to vector<1x256xi32>
    %213 = arith.cmpi sle, %2, %212 : vector<1x256xi32>
    %cst_97 = arith.constant 0.000000e+00 : f32
    %214 = vector.shape_cast %213 : vector<1x256xi1> to vector<1x256xi1>
    %215 = vector.broadcast %214 : vector<1x256xi1> to vector<8x256xi1>
    %216 = vector.broadcast %cst_97 : f32 to vector<8x256xf32>
    %217 = arith.select %215, %211, %216 : vector<8x256xi1>, vector<8x256xf32>
    %c40_98 = arith.constant 40 : index
    %c0_99 = arith.constant 0 : index
    %218 = vector.load %arg12[%c40_98, %c0_99] : memref<72x256xf32, #tpu.memory_space<vmem>>, vector<8x256xf32>
    tpu.vector_store %arg12[%c40_98, %c0_99], %217 {strides = array<i32>} : memref<72x256xf32, #tpu.memory_space<vmem>>, vector<8x256xf32>,
    %c241_i32_100 = arith.constant 241 : i32
    %219 = tpu.dynamic_rotate %151 by %c241_i32_100 dim 1 : vector<8x256xf32>, i32 -> vector<8x256xf32>
    %c15_i32_101 = arith.constant 15 : i32
    %220 = tpu.dynamic_rotate %151 by %c15_i32_101 dim 1 : vector<8x256xf32>, i32 -> vector<8x256xf32>
    %221 = vector.shape_cast %10 : vector<1x256xi1> to vector<1x256xi1>
    %222 = vector.broadcast %221 : vector<1x256xi1> to vector<8x256xi1>
    %223 = arith.select %222, %219, %220 : vector<8x256xi1>, vector<8x256xf32>
    %c14_i32_102 = arith.constant 14 : i32
    %224 = vector.broadcast %c14_i32_102 : i32 to vector<1x256xi32>
    %225 = arith.cmpi sle, %1, %224 : vector<1x256xi32>
    %c1_i32_103 = arith.constant 1 : i32
    %226 = vector.broadcast %c1_i32_103 : i32 to vector<1x256xi32>
    %227 = arith.cmpi sge, %2, %226 : vector<1x256xi32>
    %228 = arith.andi %225, %227 : vector<1x256xi1>
    %cst_104 = arith.constant 0.000000e+00 : f32
    %229 = vector.shape_cast %228 : vector<1x256xi1> to vector<1x256xi1>
    %230 = vector.broadcast %229 : vector<1x256xi1> to vector<8x256xi1>
    %231 = vector.broadcast %cst_104 : f32 to vector<8x256xf32>
    %232 = arith.select %230, %223, %231 : vector<8x256xi1>, vector<8x256xf32>
    %c48_105 = arith.constant 48 : index
    %c0_106 = arith.constant 0 : index
    %233 = vector.load %arg12[%c48_105, %c0_106] : memref<72x256xf32, #tpu.memory_space<vmem>>, vector<8x256xf32>
    tpu.vector_store %arg12[%c48_105, %c0_106], %232 {strides = array<i32>} : memref<72x256xf32, #tpu.memory_space<vmem>>, vector<8x256xf32>,
    %c240_i32_107 = arith.constant 240 : i32
    %234 = tpu.dynamic_rotate %151 by %c240_i32_107 dim 1 : vector<8x256xf32>, i32 -> vector<8x256xf32>
    %c16_i32_108 = arith.constant 16 : i32
    %235 = tpu.dynamic_rotate %151 by %c16_i32_108 dim 1 : vector<8x256xf32>, i32 -> vector<8x256xf32>
    %236 = vector.shape_cast %10 : vector<1x256xi1> to vector<1x256xi1>
    %237 = vector.broadcast %236 : vector<1x256xi1> to vector<8x256xi1>
    %238 = arith.select %237, %234, %235 : vector<8x256xi1>, vector<8x256xf32>
    %c14_i32_109 = arith.constant 14 : i32
    %239 = vector.broadcast %c14_i32_109 : i32 to vector<1x256xi32>
    %240 = arith.cmpi sle, %1, %239 : vector<1x256xi32>
    %cst_110 = arith.constant 0.000000e+00 : f32
    %241 = vector.shape_cast %240 : vector<1x256xi1> to vector<1x256xi1>
    %242 = vector.broadcast %241 : vector<1x256xi1> to vector<8x256xi1>
    %243 = vector.broadcast %cst_110 : f32 to vector<8x256xf32>
    %244 = arith.select %242, %238, %243 : vector<8x256xi1>, vector<8x256xf32>
    %c56_111 = arith.constant 56 : index
    %c0_112 = arith.constant 0 : index
    %245 = vector.load %arg12[%c56_111, %c0_112] : memref<72x256xf32, #tpu.memory_space<vmem>>, vector<8x256xf32>
    tpu.vector_store %arg12[%c56_111, %c0_112], %244 {strides = array<i32>} : memref<72x256xf32, #tpu.memory_space<vmem>>, vector<8x256xf32>,
    %c239_i32_113 = arith.constant 239 : i32
    %246 = tpu.dynamic_rotate %151 by %c239_i32_113 dim 1 : vector<8x256xf32>, i32 -> vector<8x256xf32>
    %c17_i32_114 = arith.constant 17 : i32
    %247 = tpu.dynamic_rotate %151 by %c17_i32_114 dim 1 : vector<8x256xf32>, i32 -> vector<8x256xf32>
    %248 = vector.shape_cast %10 : vector<1x256xi1> to vector<1x256xi1>
    %249 = vector.broadcast %248 : vector<1x256xi1> to vector<8x256xi1>
    %250 = arith.select %249, %246, %247 : vector<8x256xi1>, vector<8x256xf32>
    %c14_i32_115 = arith.constant 14 : i32
    %251 = vector.broadcast %c14_i32_115 : i32 to vector<1x256xi32>
    %252 = arith.cmpi sle, %1, %251 : vector<1x256xi32>
    %c14_i32_116 = arith.constant 14 : i32
    %253 = vector.broadcast %c14_i32_116 : i32 to vector<1x256xi32>
    %254 = arith.cmpi sle, %2, %253 : vector<1x256xi32>
    %255 = arith.andi %252, %254 : vector<1x256xi1>
    %cst_117 = arith.constant 0.000000e+00 : f32
    %256 = vector.shape_cast %255 : vector<1x256xi1> to vector<1x256xi1>
    %257 = vector.broadcast %256 : vector<1x256xi1> to vector<8x256xi1>
    %258 = vector.broadcast %cst_117 : f32 to vector<8x256xf32>
    %259 = arith.select %257, %250, %258 : vector<8x256xi1>, vector<8x256xf32>
    %c64_118 = arith.constant 64 : index
    %c0_119 = arith.constant 0 : index
    %260 = vector.load %arg12[%c64_118, %c0_119] : memref<72x256xf32, #tpu.memory_space<vmem>>, vector<8x256xf32>
    tpu.vector_store %arg12[%c64_118, %c0_119], %259 {strides = array<i32>} : memref<72x256xf32, #tpu.memory_space<vmem>>, vector<8x256xf32>,
    %c0_120 = arith.constant 0 : index
    %c0_121 = arith.constant 0 : index
    %261 = vector.load %arg8[%c0_120, %c0_121] : memref<8x72xf32, #tpu.memory_space<vmem>>, vector<8x72xf32>
    %c0_122 = arith.constant 0 : index
    %c0_123 = arith.constant 0 : index
    %262 = vector.load %arg12[%c0_122, %c0_123] : memref<72x256xf32, #tpu.memory_space<vmem>>, vector<72x256xf32>
    %cst_124 = arith.constant dense<0.000000e+00> : vector<8x256xf32>
    %263 = tpu.matmul %261, %262, %cst_124 {dimension_numbers = #tpu.dot_dimension_numbers<[1], [0], [0], [1], [0, 0, 1, 1], [], []>} : vector<8x72xf32>, vector<72x256xf32>, vector<8x256xf32> -> vector<8x256xf32>
    %cst_125 = arith.constant 1.250000e-01 : f32
    %264 = vector.broadcast %cst_125 : f32 to vector<1x8xf32>
    %cst_126 = arith.constant dense<0.000000e+00> : vector<1x256xf32>
    %265 = tpu.matmul %264, %263, %cst_126 {dimension_numbers = #tpu.dot_dimension_numbers<[1], [0], [0], [1], [0, 0, 1, 1], [], []>} : vector<1x8xf32>, vector<8x256xf32>, vector<1x256xf32> -> vector<1x256xf32>
    %266 = vector.broadcast %265 : vector<1x256xf32> to vector<8x256xf32>
    %267 = arith.subf %263, %266 : vector<8x256xf32>
    %268 = arith.mulf %267, %267 : vector<8x256xf32>
    %cst_127 = arith.constant dense<0.000000e+00> : vector<1x256xf32>
    %269 = tpu.matmul %264, %268, %cst_127 {dimension_numbers = #tpu.dot_dimension_numbers<[1], [0], [0], [1], [0, 0, 1, 1], [], []>} : vector<1x8xf32>, vector<8x256xf32>, vector<1x256xf32> -> vector<1x256xf32>
    %cst_128 = arith.constant 9.99999997E-7 : f32
    %270 = vector.broadcast %cst_128 : f32 to vector<1x256xf32>
    %271 = arith.addf %269, %270 : vector<1x256xf32>
    %272 = math.rsqrt %271 : vector<1x256xf32>
    %273 = vector.broadcast %272 : vector<1x256xf32> to vector<8x256xf32>
    %274 = arith.mulf %267, %273 : vector<8x256xf32>
    %c0_129 = arith.constant 0 : index
    %c0_130 = arith.constant 0 : index
    %275 = vector.load %arg9[%c0_129, %c0_130] : memref<8x1xf32, #tpu.memory_space<vmem>>, vector<8x1xf32>
    %276 = vector.broadcast %275 : vector<8x1xf32> to vector<8x256xf32>
    %277 = arith.mulf %274, %276 : vector<8x256xf32>
    %c0_131 = arith.constant 0 : index
    %c0_132 = arith.constant 0 : index
    %278 = vector.load %arg10[%c0_131, %c0_132] : memref<8x1xf32, #tpu.memory_space<vmem>>, vector<8x1xf32>
    %279 = vector.broadcast %278 : vector<8x1xf32> to vector<8x256xf32>
    %280 = arith.addf %277, %279 : vector<8x256xf32>
    %cst_133 = arith.constant 5.000000e-01 : f32
    %281 = vector.broadcast %cst_133 : f32 to vector<8x256xf32>
    %282 = arith.mulf %281, %280 : vector<8x256xf32>
    %cst_134 = arith.constant 0.707106769 : f32
    %283 = vector.broadcast %cst_134 : f32 to vector<8x256xf32>
    %284 = arith.mulf %280, %283 : vector<8x256xf32>
    %285 = math.erf %284 : vector<8x256xf32>
    %cst_135 = arith.constant 1.000000e+00 : f32
    %286 = vector.broadcast %cst_135 : f32 to vector<8x256xf32>
    %287 = arith.addf %286, %285 : vector<8x256xf32>
    %288 = arith.mulf %282, %287 : vector<8x256xf32>
    %c0_136 = arith.constant 0 : index
    %c0_137 = arith.constant 0 : index
    %c0_138 = arith.constant 0 : index
    %289 = vector.load %arg11[%c0_136, %c0_137, %c0_138] : memref<1x8x256xf32, #tpu.memory_space<vmem>>, vector<1x8x256xf32>
    %290 = vector.shape_cast %289 : vector<1x8x256xf32> to vector<8x256xf32>
    %291 = vector.shape_cast %288 : vector<8x256xf32> to vector<1x8x256xf32>
    tpu.vector_store %arg11[%c0_136, %c0_137, %c0_138], %291 {strides = array<i32>} : memref<1x8x256xf32, #tpu.memory_space<vmem>>, vector<1x8x256xf32>,
    return
  }
  func.func @transform_0(%arg0: i32) -> (i32, i32) {
    %c0_i32 = arith.constant 0 : i32
    %c0_i32_0 = arith.constant 0 : i32
    %c0_i32_1 = arith.constant 0 : i32
    return %c0_i32, %c0_i32_0 : i32, i32
  }
  func.func @transform_1(%arg0: i32) -> (i32, i32) {
    %c0_i32 = arith.constant 0 : i32
    %c0_i32_0 = arith.constant 0 : i32
    %c0_i32_1 = arith.constant 0 : i32
    return %c0_i32, %c0_i32_0 : i32, i32
  }
  func.func @transform_2(%arg0: i32) -> (i32, i32) {
    %c0_i32 = arith.constant 0 : i32
    %c0_i32_0 = arith.constant 0 : i32
    %c0_i32_1 = arith.constant 0 : i32
    return %c0_i32, %c0_i32_0 : i32, i32
  }
  func.func @transform_3(%arg0: i32) -> (i32, i32, i32) {
    %c0_i32 = arith.constant 0 : i32
    %c0_i32_0 = arith.constant 0 : i32
    %c0_i32_1 = arith.constant 0 : i32
    return %arg0, %c0_i32, %c0_i32_0 : i32, i32, i32
  }
  func.func @transform_4(%arg0: i32) -> (i32, i32) {
    %c0_i32 = arith.constant 0 : i32
    %c0_i32_0 = arith.constant 0 : i32
    %c0_i32_1 = arith.constant 0 : i32
    return %c0_i32, %c0_i32_0 : i32, i32
  }
  func.func @transform_5(%arg0: i32) -> (i32, i32) {
    %c0_i32 = arith.constant 0 : i32
    %c0_i32_0 = arith.constant 0 : i32
    %c0_i32_1 = arith.constant 0 : i32
    return %c0_i32, %c0_i32_0 : i32, i32
  }
  func.func @transform_6(%arg0: i32) -> (i32, i32) {
    %c0_i32 = arith.constant 0 : i32
    %c0_i32_0 = arith.constant 0 : i32
    %c0_i32_1 = arith.constant 0 : i32
    return %c0_i32, %c0_i32_0 : i32, i32
  }
  func.func @transform_7(%arg0: i32) -> (i32, i32) {
    %c0_i32 = arith.constant 0 : i32
    %c0_i32_0 = arith.constant 0 : i32
    %c0_i32_1 = arith.constant 0 : i32
    return %c0_i32, %c0_i32_0 : i32, i32
  }
  func.func @transform_8(%arg0: i32) -> (i32, i32) {
    %c0_i32 = arith.constant 0 : i32
    %c0_i32_0 = arith.constant 0 : i32
    %c0_i32_1 = arith.constant 0 : i32
    return %c0_i32, %c0_i32_0 : i32, i32
  }
  func.func @transform_9(%arg0: i32) -> (i32, i32) {
    %c0_i32 = arith.constant 0 : i32
    %c0_i32_0 = arith.constant 0 : i32
    %c0_i32_1 = arith.constant 0 : i32
    return %c0_i32, %c0_i32_0 : i32, i32
  }
  func.func @transform_10(%arg0: i32) -> (i32, i32, i32) {
    %c0_i32 = arith.constant 0 : i32
    %c0_i32_0 = arith.constant 0 : i32
    %c0_i32_1 = arith.constant 0 : i32
    return %arg0, %c0_i32, %c0_i32_0 : i32, i32, i32
  }
}

</mosaic_0001>

<bundles_post_ra>
// kernel: tpu_custom_call.1
= control target key start
LH: loop header
LB: loop body
LE: loop exit
PB: predicated region body
PF: predicated region fallthrough
CT: control target
= control target key end

     0   :  { %s2219_s0 = inlined_call_operand.vmem [shape: s32[1,256], index: 0, kind: input, shape index: {}]   ;;  %s2220_s1 = inlined_call_operand.vmem [shape: s32[1,256], index: 1, kind: input, shape index: {}]   ;;  %s2221_s2 = inlined_call_operand.vmem [shape: s32[1,256], index: 2, kind: input, shape index: {}]   ;;  %s2222_s3 = inlined_call_operand.vmem [shape: f32[2,4,256], index: 3, kind: input, shape index: {}]   ;;  %s2223_s4 = inlined_call_operand.vmem [shape: f32[8,72], index: 4, kind: input, shape index: {}]   ;;  %s2224_s5 = inlined_call_operand.vmem [shape: f32[8,1], index: 5, kind: input, shape index: {}]   ;;  %s2225_s6 = inlined_call_operand.vmem [shape: f32[8,1], index: 6, kind: input, shape index: {}]   ;;  %s2226_s7 = inlined_call_operand.vmem [shape: f32[8,72], index: 7, kind: input, shape index: {}]   ;;  %s2227_s8 = inlined_call_operand.vmem [shape: f32[8,1], index: 8, kind: input, shape index: {}]   ;;  %s2228_s9 = inlined_call_operand.vmem [shape: f32[8,1], index: 9, kind: input, shape index: {}]   ;;  %s2229_s10 = inlined_call_operand.hbm [shape: f32[2,8,256], index: 10, kind: output, shape index: {}]  }
   0x1   :  { %2254 = sst [smem:[#allocation6_spill]] %s2219_s0 }
   0x2   :  { %15 = vsyncpa [#allocation4], 0 }
   0x3   :  { %17 = vsyncpa [#allocation4 + $0x1], 0  ;;  %s1610_s13 = smov 0   ;;  %s1612_s14 = smov 0  }
   0x4   :  { %s1614_s15 = smov 0   ;;  %s1616_s16 = smov 0  }
   0x5 LB: > { %s1631_s17 = sadd.s32 4294967295, %s1541_s16   ;;  %s1375_s18 = sadd.s32 4294967294, %s1541_s16   ;;  %s1541_s16 = sphi %s1616_s16, %s2337_s16   ;;  %s1537_s15 = sphi %s1614_s15, %s2336_s15   ;;  %s1533_s14 = sphi %s1612_s14, %s2335_s14   ;;  %s1529_s13 = sphi %s1610_s13, %s2334_s13  }
   0x6   : > { %s1635_s19 = sadd.s32 1, %s1541_s16   ;;  %s245_s20 = sadd.s32 1, %s1537_s15 }
   0x7   : > { %s242_s21 = ssub.s32 %s1541_s16, %s1635_s19  ;;  %p255_p0 = scmp.ne.s32.totalorder %s1537_s15, %s1533_s14 }
   0x8   : > { %p243_p1 = scmp.eq.s32.totalorder %s242_s21, 0  ;;  %p256_p2 = scmp.eq.s32.totalorder %s1631_s17, 1 }
   0x9   : > { %p261_p3 = scmp.ne.s32.totalorder %s1533_s14, %s1529_s13  ;;  %p262_p4 = scmp.eq.s32.totalorder %s1375_s18, 1 }
   0xa   : > { %s1646_s22 = scalar_select %p243_p1, %s1537_s15, %s245_s20  }
   0xb   : > { %p1648_p5 = por %p256_p2, %p255_p0  ;;  %p1652_p6 = por %p262_p4, %p261_p3 }
   0xc   : > { %p1378_p7 = scmp.ge.s32.totalorder %s1541_s16, 1  ;;  %p315_p8 = scmp.lt.s32.totalorder %s1541_s16, 3 }
   0xe   : > { %p316_p9 = pnand %p1378_p7, %p315_p8 }
   0xf   : > { %p353_p10 = scmp.lt.s32.totalorder (!%p316_p9), %s1631_s17, 1  ;;  %s2257_s0 = sld [smem:[#allocation6_spill]] (!%p316_p9) }
  0x10   : > { %319 = sbr.rel (%p316_p9) target bundleno = 1645 (0x66d), region = 60  ;;  %s1544_s12 = smov (!%p316_p9), 111  }
  0x11   : > { %s1545_s18 = smov (!%p316_p9), 17   ;;  %s1547_s20 = smov (!%p316_p9), 1  }
  0x12   : > { %s1548_s21 = smov (!%p316_p9), 16   ;;  %s1549_s25 = smov (!%p316_p9), 112  }
  0x13   : > { %s2230_s26 = smov (!%p316_p9), 15   ;;  %s2306_s30 = smov (!%p316_p9), 15  }
  0x15   : > { %v358_v0 = vld [vmem:[%s2257_s0] sm:$0x3]  ;;  %v364_v1 = vlaneseq  ;;  %v1543_v3 = vmov 0   ;;  %s354_s27 = scalar_select %p353_p10, %s1631_s17, 1  ;;  %v1546_v12 = vmov 0.0   ;;  %v2258_v34 = vmov 0 }
  0x16   : > { %vm361_vm0 = vcmp.eq.s32.totalorder %v358_v0, 0  ;;  %v1382_v2 = vadd.s32 4294967295, %v358_v0  ;;  %1446 = vset.pattern.permute.xlu0 %v1543_v3  ;;  %1447 = vset.pattern.permute.xlu1 %v1543_v3  ;;  %392 = vst [vmem:[#allocation2] sm:$0xff] %v1546_v12  ;;  %393 = vst [vmem:[#allocation2 + $0x38] sm:$0xff] %v1546_v12  ;;  %v359_v14 = vld [vmem:[%s2220_s1] sm:$0x3] }
  0x17   : > { %v365_v4 = vshrl.u32 %v364_v1, 7  ;;  %s1394_s28 = sshll.u32 %s354_s27, 3  ;;  %408 = vst [vmem:[#allocation2 + $0x68] sm:$0xff] %v1546_v12  ;;  %409 = vst [vmem:[#allocation2 + $0x60] sm:$0xff] %v1546_v12  ;;  %713 = vmatprep.mubr.f32.mxu0 %v1546_v12  ;;  %788 = vmatprep.mubr.f32.mxu1 %v1546_v12  ;;  %s1551_s27 = smov 113   ;;  %vm441_vm1 = vcmp.ge.s32.totalorder %v359_v14, 1 }
  0x18   : > { %v1666_v5 = vsel %vm361_vm0, 255, %v1382_v2  ;;  %s357_s11 = scalar_lea.vmem %s2222_s3, %s1394_s28  ;;  %394 = vst [vmem:[#allocation2 + $0x78] sm:$0xff] %v1546_v12  ;;  %395 = vst [vmem:[#allocation2 + $0x58] sm:$0xff] %v1546_v12  ;;  %s1552_s28 = smov 127   ;;  %v1723_v15 = vld [vmem:[%s2221_s2] sm:$0x3] }
  0x19   : > { %v1668_v6 = vsub.s32 0, %v365_v4  ;;  %v1670_v7 = vsub.s32 1, %v365_v4  ;;  %v391_v8 = vld [vmem:[%s357_s11] sm:$0xff]  ;;  %396 = vst [vmem:[#allocation2 + $0x20] sm:$0xff] %v1546_v12  ;;  %397 = vst [vmem:[#allocation2 + $0x8] sm:$0xff] %v1546_v12  ;;  %vm2237_vm2 = vcmp.ge.s32.totalorder %v1723_v15, 1 }
  0x1a   : > { %420 = vrot.lane.b32.xlu0 %v391_v8, %s1544_s12  ;;  %413 = vrot.lane.b32.xlu1 %v391_v8, %s1545_s18  ;;  %v411_v11 = vcombine.high %v391_v8, %v391_v8  ;;  %398 = vst [vmem:[#allocation2 + $0x70] sm:$0xff] %v1546_v12  ;;  %399 = vst [vmem:[#allocation2 + $0x80] sm:$0xff] %v1546_v12  ;;  %vm2233_vm3 = vcmp.le.s32.totalorder %v1723_v15, 14  ;;  %vm574_vm4 = vcmp.le.s32.totalorder %v359_v14, 14  ;;  %v1734_v18 = vand.u32 127, %v364_v1  ;;  %v1014_v58 = vld [vmem:[%s2226_s7] sm:$0xff] }
  0x1b   : > { %v388_v9 = vrot.slane %v1666_v5, %v1670_v7  ;;  %v367_v10 = vrot.slane %v358_v0, %v1668_v6  ;;  %400 = vst [vmem:[#allocation2 + $0x88] sm:$0xff] %v1546_v12  ;;  %401 = vst [vmem:[#allocation2 + $0x40] sm:$0xff] %v1546_v12  ;;  %v371_v13 = vrot.slane %v358_v0, %v1670_v7  ;;  %v475_v21 = vsel %vm441_vm1, 1, %v1543_v3 }
  0x1c   : > { %402 = vst [vmem:[#allocation2 + $0x50] sm:$0xff] %v1546_v12  ;;  %403 = vst [vmem:[#allocation2 + $0x28] sm:$0xff] %v1546_v12  ;;  %v593_v26 = vsel %vm574_vm4, 1, %v1543_v3  ;;  %vm2236_vm7 = vcmp.lt.s32.totalorder %v1734_v18, 17  ;;  %vm2232_vm8 = vcmp.lt.s32.totalorder %v1734_v18, 1  ;;  %v384_v28 = vrot.slane %v1666_v5, %v1668_v6 }
  0x1d   : > { %404 = vst [vmem:[#allocation2 + $0x10] sm:$0xff] %v1546_v12  ;;  %405 = vst [vmem:[#allocation2 + $0x48] sm:$0xff] %v1546_v12  ;;  %v479_v30 = vrot.slane %v475_v21, %v1668_v6  ;;  %vm2235_vm10 = vcmp.lt.s32.totalorder %v1734_v18, 111  ;;  %vm2234_vm11 = vcmp.lt.s32.totalorder %v1734_v18, 16  ;;  %v483_v31 = vrot.slane %v475_v21, %v1670_v7 }
  0x1e   : > { %406 = vst [vmem:[#allocation2 + $0x30] sm:$0xff] %v1546_v12  ;;  %407 = vst [vmem:[#allocation2 + $0x18] sm:$0xff] %v1546_v12  ;;  %372 = vrot.lane.b32.xlu0 %v367_v10, %s1547_s20  ;;  %415 = vrot.lane.b32.xlu1 %v411_v11, %s1545_s18  ;;  %v597_v32 = vrot.slane %v593_v26, %v1668_v6  ;;  %v2260_v35 = vmov 0  ;;  %v601_v37 = vrot.slane %v593_v26, %v1670_v7  ;;  %v2266_v43 = vmov 0 }
  0x1f   : > { %553 = vst [vmem:[#allocation2 + $0x88] sm:$0xf] %v391_v8  ;;  %554 = vst [vmem:[#allocation2 + $0x40] sm:$0xf] %v411_v11  ;;  %v2268_v46 = vmov 0  ;;  %v2270_v47 = vmov 0 }
  0x20   : > { %vm443_vm5 = vmand %vm441_vm1, %vm2237_vm2  ;;  %vm1803_vm14 = vcmp.eq.s32.totalorder %v601_v37, 1  ;;  %v2272_v52 = vmov 0 }
  0x21   : > { %vm610_vm6 = vmand %vm574_vm4, %vm2233_vm3  ;;  %v444_v19 = vsel %vm443_vm5, 1, %v1543_v3  ;;  %v2273_v52 = vsel %vm1803_vm14, 4294967295, %v2272_v52 }
  0x22   : > { %374 = vrot.lane.b32.xlu0 %v371_v13, %s1547_s20  ;;  %422 = vrot.lane.b32.xlu1 %v411_v11, %s1544_s12  ;;  %v611_v20 = vsel %vm610_vm6, 1, %v1543_v3  ;;  %v448_v24 = vrot.slane %v444_v19, %v1668_v6  ;;  %v452_v25 = vrot.slane %v444_v19, %v1670_v7  ;;  %vm507_vm9 = vmand %vm441_vm1, %vm2233_vm3  ;;  %vm1784_vm6 = vcmp.eq.s32.totalorder %v479_v30, 1 }
  0x23   : > { %v615_v27 = vrot.slane %v611_v20, %v1668_v6  ;;  %v619_v29 = vrot.slane %v611_v20, %v1670_v7  ;;  %v508_v41 = vsel %vm507_vm9, 1, %v1543_v3  ;;  %v2267_v43 = vsel %vm1784_vm6, 4294967295, %v2266_v43 }
  0x24   : > { %vm1758_vm12 = vcmp.eq.s32.totalorder %v448_v24, 1  ;;  %vm1762_vm13 = vcmp.eq.s32.totalorder %v452_v25, 1  ;;  %vm1793_vm9 = vcmp.eq.s32.totalorder %v483_v31, 1  ;;  %vm1797_vm3 = vcmp.eq.s32.totalorder %v597_v32, 1 }
  0x25   : > { %v2259_v34 = vsel %vm1758_vm12, 4294967295, %v2258_v34  ;;  %v2261_v35 = vsel %vm1762_vm13, 4294967295, %v2260_v35  ;;  %vm1772_vm15 = vcmp.eq.s32.totalorder %v615_v27, 1  ;;  %vm1780_vm5 = vcmp.eq.s32.totalorder %v619_v29, 1 }
  0x26   : > { %459 = vrot.lane.b32.xlu0 %v391_v8, %s1548_s21  ;;  %461 = vrot.lane.b32.xlu1 %v411_v11, %s1548_s21  ;;  %v2269_v46 = vsel %vm1793_vm9, 4294967295, %v2268_v46  ;;  %v2271_v47 = vsel %vm1797_vm3, 4294967295, %v2270_v47  ;;  %v512_v53 = vrot.slane %v508_v41, %v1668_v6  ;;  %v516_v56 = vrot.slane %v508_v41, %v1670_v7 }
  0x2a   : > { %466 = vrot.lane.b32.xlu0 %v391_v8, %s1549_s25  ;;  %468 = vrot.lane.b32.xlu1 %v411_v11, %s1549_s25 }
  0x2e   : > { %490 = vrot.lane.b32.xlu0 %v391_v8, %s2230_s26  ;;  %492 = vrot.lane.b32.xlu1 %v411_v11, %s2230_s26  ;;  %s1395_s26 = sshll.u32 %s1631_s17, 8  ;;  %s1554_s17 = smov [#allocation3]  }
  0x32   : > { %497 = vrot.lane.b32.xlu0 %v391_v8, %s1551_s27  ;;  %499 = vrot.lane.b32.xlu1 %v411_v11, %s1551_s27 }
  0x36   : > { %523 = vrot.lane.b32.xlu0 %v391_v8, %s1547_s20  ;;  %525 = vrot.lane.b32.xlu1 %v411_v11, %s1547_s20 }
  0x3a   : > { %529 = vrot.lane.b32.xlu0 %v391_v8, %s1552_s28  ;;  %531 = vrot.lane.b32.xlu1 %v411_v11, %s1552_s28 }
  0x8c   : > { %v421_v16 = vpop.permute.xlu0 %420  ;;  %v414_v17 = vpop.permute.xlu1 %413 }
  0x90   : > { %v373_v22 = vpop.permute.xlu0 %372  ;;  %v416_v23 = vpop.permute.xlu1 %415 }
  0x91   : > { %v418_v54 = vsel %vm2236_vm7, %v414_v17, %v416_v23  ;;  %v419_v55 = vsel %vm2236_vm7, %v416_v23, %v414_v17 }
  0x94   : > { %v375_v33 = vpop.permute.xlu0 %374  ;;  %v423_v36 = vpop.permute.xlu1 %422 }
  0x95   : > { %v379_v38 = vsel %vm2232_vm8, %v373_v22, %v375_v33  ;;  %v380_v39 = vsel %vm2232_vm8, %v375_v33, %v373_v22  ;;  %vm575_vm8 = vmand %vm574_vm4, %vm2237_vm2  ;;  %v425_v60 = vsel %vm2235_vm10, %v421_v16, %v423_v36  ;;  %v426_v61 = vsel %vm2235_vm10, %v423_v36, %v421_v16 }
  0x96   : > { %vm389_vm0 = vcmp.eq.s32.totalorder %v380_v39, %v384_v28  ;;  %vm390_vm1 = vcmp.eq.s32.totalorder %v379_v38, %v388_v9  ;;  %v576_v57 = vsel %vm575_vm8, 1, %v1543_v3  ;;  %vm2278_vm8 = vcmp.lt.s32.totalorder %v1734_v18, 112 }
  0x97   : > { %v427_v44 = vsel %vm389_vm0, 1, %v1543_v3  ;;  %v428_v45 = vsel %vm390_vm1, 1, %v1543_v3  ;;  %vm2279_vm1 = vmmov %vm2278_vm8  ;;  %v580_v28 = vrot.slane %v576_v57, %v1668_v6  ;;  %v584_v29 = vrot.slane %v576_v57, %v1670_v7 }
  0x98   : > { %v432_v48 = vrot.slane %v427_v44, %v1668_v6  ;;  %v436_v49 = vrot.slane %v428_v45, %v1668_v6  ;;  %v460_v50 = vpop.permute.xlu0 %459  ;;  %v462_v51 = vpop.permute.xlu1 %461  ;;  %vm1874_vm10 = vcmp.eq.s32.totalorder %v516_v56, 1  ;;  %v2284_v33 = vmov 0 }
  0x99   : > { %v464_v11 = vsel %vm2234_vm11, %v460_v50, %v462_v51  ;;  %v465_v13 = vsel %vm2234_vm11, %v462_v51, %v460_v50  ;;  %vm1870_vm11 = vcmp.eq.s32.totalorder %v512_v53, 1  ;;  %vm1878_vm7 = vcmp.eq.s32.totalorder %v580_v28, 1 }
  0x9a   : > { %vm1814_vm4 = vcmp.eq.s32.totalorder %v432_v48, 1  ;;  %vm1818_vm0 = vcmp.eq.s32.totalorder %v436_v49, 1  ;;  %v2285_v33 = vsel %vm1878_vm7, 4294967295, %v2284_v33  ;;  %vm1882_vm2 = vcmp.eq.s32.totalorder %v584_v29, 1 }
  0x9b   : > { %v439_v62 = vsel %vm1814_vm4, %v419_v55, %v425_v60  ;;  %v440_v63 = vsel %vm1818_vm0, %v418_v54, %v426_v61  ;;  %v608_v0 = vsel %vm1814_vm4, %v425_v60, %v419_v55  ;;  %v609_v1 = vsel %vm1818_vm0, %v426_v61, %v418_v54 }
  0x9c   : > { %v455_v2 = vsel %vm1758_vm12, %v439_v62, 0.0  ;;  %v456_v4 = vsel %vm1762_vm13, %v440_v63, 0.0  ;;  %v622_v5 = vsel %vm1772_vm15, %v608_v0, 0.0  ;;  %v623_v8 = vsel %vm1780_vm5, %v609_v1, 0.0  ;;  %v467_v9 = vpop.permute.xlu0 %466  ;;  %v469_v10 = vpop.permute.xlu1 %468 }
  0x9d   : > { %457 = vst [vmem:[#allocation2] sm:$0xf] %v455_v2  ;;  %458 = vst [vmem:[#allocation2 + $0x38] sm:$0xf] %v456_v4  ;;  %v471_v14 = vsel %vm2278_vm8, %v467_v9, %v469_v10  ;;  %v472_v16 = vsel %vm2279_vm1, %v469_v10, %v467_v9  ;;  %v2286_v36 = vmov 0  ;;  %vm2288_vm1 = vcmp.ge.s32.totalorder %v1723_v15, 1 }
  0x9e   : > { %624 = vst [vmem:[#allocation2 + $0x68] sm:$0xf] %v622_v5  ;;  %625 = vst [vmem:[#allocation2 + $0x60] sm:$0xf] %v623_v8  ;;  %v473_v17 = vsel %vm1814_vm4, %v465_v13, %v471_v14  ;;  %v474_v19 = vsel %vm1818_vm0, %v464_v11, %v472_v16  ;;  %v591_v20 = vsel %vm1814_vm4, %v471_v14, %v465_v13  ;;  %v2287_v36 = vsel %vm1882_vm2, 4294967295, %v2286_v36 }
  0x9f   : > { %v592_v21 = vsel %vm1818_vm0, %v472_v16, %v464_v11  ;;  %v486_v22 = vsel %vm1784_vm6, %v473_v17, 0.0  ;;  %v487_v23 = vsel %vm1793_vm9, %v474_v19, 0.0  ;;  %v604_v24 = vsel %vm1797_vm3, %v591_v20, 0.0 }
  0xa0   : > { %v605_v25 = vsel %vm1803_vm14, %v592_v21, 0.0  ;;  %488 = vst [vmem:[#allocation2 + $0x78] sm:$0xf] %v486_v22  ;;  %489 = vst [vmem:[#allocation2 + $0x58] sm:$0xf] %v487_v23  ;;  %v491_v26 = vpop.permute.xlu0 %490  ;;  %v493_v27 = vpop.permute.xlu1 %492  ;;  %v538_v41 = vsel %vm2288_vm1, 1, %v1543_v3 }
  0xa1   : > { %606 = vst [vmem:[#allocation2 + $0x30] sm:$0xf] %v604_v24  ;;  %607 = vst [vmem:[#allocation2 + $0x18] sm:$0xf] %v605_v25  ;;  %vm2289_vm8 = vcmp.le.s32.totalorder %v1723_v15, 14  ;;  %vm2290_vm14 = vcmp.lt.s32.totalorder %v1734_v18, 15  ;;  %v542_v0 = vrot.slane %v538_v41, %v1668_v6  ;;  %v546_v1 = vrot.slane %v538_v41, %v1670_v7 }
  0xa2   : > { %v557_v44 = vsel %vm2289_vm8, 1, %v1543_v3  ;;  %v495_v45 = vsel %vm2290_vm14, %v491_v26, %v493_v27  ;;  %vm2291_vm3 = vmmov %vm2290_vm14  ;;  %vm2292_vm9 = vcmp.lt.s32.totalorder %v1734_v18, 113  ;;  %vm2302_vm1 = vcmp.lt.s32.totalorder %v1734_v18, 1 }
  0xa3   : > { %v496_v48 = vsel %vm2291_vm3, %v493_v27, %v491_v26  ;;  %vm2293_vm6 = vmmov %vm2292_vm9  ;;  %v561_v2 = vrot.slane %v557_v44, %v1668_v6  ;;  %v565_v4 = vrot.slane %v557_v44, %v1670_v7  ;;  %vm1921_vm14 = vcmp.eq.s32.totalorder %v542_v0, 1 }
  0xa4   : > { %v498_v32 = vpop.permute.xlu0 %497  ;;  %v500_v37 = vpop.permute.xlu1 %499  ;;  %vm2303_vm3 = vmmov %vm2302_vm1 }
  0xa5   : > { %v644_v38 = vld [vmem:[#allocation2 + $0x60] sm:$0xff]  ;;  %v643_v39 = vld [vmem:[#allocation2 + $0x68] sm:$0xff]  ;;  %v502_v49 = vsel %vm2292_vm9, %v498_v32, %v500_v37  ;;  %v503_v50 = vsel %vm2293_vm6, %v500_v37, %v498_v32  ;;  %vm1925_vm6 = vcmp.eq.s32.totalorder %v546_v1, 1  ;;  %vm1929_vm9 = vcmp.eq.s32.totalorder %v561_v2, 1 }
  0xa6   : > { %663 = vmatprep.subr.mxu0 %v644_v38  ;;  %v504_v51 = vsel %vm1814_vm4, %v496_v48, %v502_v49  ;;  %v505_v15 = vsel %vm1818_vm0, %v495_v45, %v503_v50  ;;  %v572_v3 = vsel %vm1814_vm4, %v502_v49, %v496_v48  ;;  %v573_v53 = vsel %vm1818_vm0, %v503_v50, %v495_v45  ;;  %v636_v37 = vld [vmem:[#allocation2 + $0x40] sm:$0xff]  ;;  %v635_v38 = vld [vmem:[#allocation2 + $0x88] sm:$0xff]  ;;  %v628_v50 = vld [vmem:[#allocation2 + $0x38] sm:$0xff] }
  0xa7   : > { %664 = vmatpush1.msra.mxu0 %v643_v39  ;;  %v519_v54 = vsel %vm1870_vm11, %v504_v51, 0.0  ;;  %v520_v55 = vsel %vm1874_vm10, %v505_v15, 0.0  ;;  %v587_v56 = vsel %vm1878_vm7, %v572_v3, 0.0  ;;  %v588_v57 = vsel %vm1882_vm2, %v573_v53, 0.0  ;;  %v630_v48 = vld [vmem:[#allocation2 + $0x58] sm:$0xff]  ;;  %v626_v51 = vld [vmem:[%s2223_s4] sm:$0xff] }
  0xa8   : > { %v642_v60 = vld [vmem:[#allocation2 + $0x18] sm:$0xff]  ;;  %v641_v61 = vld [vmem:[#allocation2 + $0x30] sm:$0xff]  ;;  %521 = vst [vmem:[#allocation2 + $0x20] sm:$0xf] %v519_v54  ;;  %522 = vst [vmem:[#allocation2 + $0x8] sm:$0xf] %v520_v55  ;;  %v524_v62 = vpop.permute.xlu0 %523  ;;  %v526_v63 = vpop.permute.xlu1 %525 }
  0xa9   : > { %589 = vst [vmem:[#allocation2 + $0x10] sm:$0xf] %v587_v56  ;;  %590 = vst [vmem:[#allocation2 + $0x48] sm:$0xf] %v588_v57  ;;  %665 = vmatprep.subr.mxu0 %v642_v60  ;;  %vm1933_vm8 = vcmp.eq.s32.totalorder %v565_v4, 1  ;;  %v527_v13 = vsel %vm2302_vm1, %v524_v62, %v526_v63  ;;  %v528_v14 = vsel %vm2303_vm3, %v526_v63, %v524_v62  ;;  %vm2304_vm2 = vcmp.lt.s32.totalorder %v1734_v18, 127 }
  0xaa   : > { %666 = vmatpush1.msra.mxu0 %v641_v61  ;;  %vm2305_vm7 = vmmov %vm2304_vm2  ;;  %v629_v49 = vld [vmem:[#allocation2 + $0x78] sm:$0xff]  ;;  %v627_v15 = vld [vmem:[#allocation2] sm:$0xff]  ;;  %v1553_v54 = vmov 0.125   ;;  %vm2307_vm3 = vcmp.lt.s32.totalorder %v1734_v18, 17 }
  0xab   : > { %v890_v55 = vld [vmem:[%s2224_s5] sm:$0xff]  ;;  %vm2308_vm1 = vmmov %vm2307_vm3 }
  0xac   : > { %v530_v5 = vpop.permute.xlu0 %529  ;;  %v532_v7 = vpop.permute.xlu1 %531  ;;  %v898_v56 = vld [vmem:[%s2225_s6] sm:$0xff]  ;;  %893 = vperm.xlu0 %1446, %v890_v55  }
  0xad   : > { %v534_v16 = vsel %vm2304_vm2, %v530_v5, %v532_v7  ;;  %v535_v17 = vsel %vm2305_vm7, %v532_v7, %v530_v5  ;;  %vm2251_vm2 = vcmask 588800   ;;  %vm2250_vm7 = vcmask 64512   ;;  %901 = vperm.xlu1 %1447, %v898_v56  }
  0xae   : > { %v536_v19 = vsel %vm1814_vm4, %v528_v14, %v534_v16  ;;  %v537_v20 = vsel %vm1818_vm0, %v527_v13, %v535_v17  ;;  %v555_v21 = vsel %vm1814_vm4, %v534_v16, %v528_v14  ;;  %v556_v22 = vsel %vm1818_vm0, %v535_v17, %v527_v13 }
  0xaf   : > { %v549_v23 = vsel %vm1921_vm14, %v536_v19, 0.0  ;;  %v550_v24 = vsel %vm1925_vm6, %v537_v20, 0.0  ;;  %v568_v25 = vsel %vm1929_vm9, %v555_v21, 0.0  ;;  %v569_v26 = vsel %vm1933_vm8, %v556_v22, 0.0  ;;  %v632_v44 = vld [vmem:[#allocation2 + $0x8] sm:$0xff]  ;;  %v631_v45 = vld [vmem:[#allocation2 + $0x20] sm:$0xff] }
  0xb0   : > { %v640_v27 = vld [vmem:[#allocation2 + $0x48] sm:$0xff]  ;;  %v639_v28 = vld [vmem:[#allocation2 + $0x10] sm:$0xff]  ;;  %551 = vst [vmem:[#allocation2 + $0x70] sm:$0xf] %v549_v23  ;;  %552 = vst [vmem:[#allocation2 + $0x80] sm:$0xf] %v550_v24 }
  0xb1   : > { %570 = vst [vmem:[#allocation2 + $0x50] sm:$0xf] %v568_v25  ;;  %571 = vst [vmem:[#allocation2 + $0x28] sm:$0xf] %v569_v26  ;;  %667 = vmatprep.subr.mxu0 %v640_v27 }
  0xb2   : > { %668 = vmatpush1.msra.mxu0 %v639_v28 }
  0xb7   : > { %v634_v39 = vld [vmem:[#allocation2 + $0x80] sm:$0xff]  ;;  %v633_v41 = vld [vmem:[#allocation2 + $0x70] sm:$0xff] }
  0xb8   : > { %v638_v29 = vld [vmem:[#allocation2 + $0x28] sm:$0xff]  ;;  %v637_v32 = vld [vmem:[#allocation2 + $0x50] sm:$0xff] }
  0xb9   : > { %669 = vmatprep.subr.mxu0 %v638_v29 }
  0xba   : > { %670 = vmatpush1.msra.mxu0 %v637_v32 }
  0xbb   : > { %671 = vmatprep.subr.mxu0 %v636_v37 }
  0xbc   : > { %672 = vmatpush1.msra.mxu0 %v635_v38 }
  0xbd   : > { %673 = vmatprep.subr.mxu0 %v634_v39 }
  0xbe   : > { %674 = vmatpush1.msra.mxu0 %v633_v41 }
  0xbf   : > { %675 = vmatprep.subr.mxu0 %v632_v44 }
  0xc0   : > { %676 = vmatpush1.msra.mxu0 %v631_v45 }
  0xc1   : > { %677 = vmatprep.subr.mxu0 %v630_v48 }
  0xc2   : > { %678 = vmatpush1.msra.mxu0 %v629_v49  ;;  %v1273_v49 = vld [vmem:[%s2227_s8] sm:$0xff] }
  0xc3   : > { %679 = vmatprep.subr.mxu0 %v628_v50  ;;  %v1281_v50 = vld [vmem:[%s2228_s9] sm:$0xff] }
  0xc4   : > { %680 = vmatpush1.msra.mxu0 %v627_v15 }
  0xc5   : > { %1383 = vmatmul.mubr.msk.f32.vlgmr.msra.gmra.mxu0 %vm2251_vm2, %v626_v51 }
  0xc6   : > { %1171 = vmatprep.mubr.f32.mxu0 %v1546_v12 }
 0x127   : > { %v894_v19 = vpop.permute.xlu0 %893 }
 0x128   : > { %v902_v22 = vpop.permute.xlu1 %901 }
 0x185   : > { %v715_v3 = vpop.f32.mrf.mxu0 }
 0x187   : > { %v717_v53 = vpop.f32.mrf.mxu0 }
 0x188   : > { %754 = vmatprep.subr.mxu1 %v717_v53 }
 0x189   : > { %755 = vmatpush1.msra.mxu1 %v715_v3 }
 0x18a   : > { %1384 = vmatmul.mubr.msk.f32.vlgmr.msra.gmra.mxu1 %vm2250_vm7, %v1553_v54 }
 0x18b   : > { %871 = vmatprep.mubr.f32.mxu1 %v1546_v12 }
 0x24a   : > { %v790_v57 = vpop.f32.mrf.mxu1 }
 0x24b   : > { %v798_v60 = vrot.slane %v790_v57, %v1668_v6 }
 0x24c   : > { %v792_v61 = vpop.f32.mrf.mxu1 }
 0x24d   : > { %v802_v62 = vrot.slane %v792_v61, %v1668_v6  ;;  %v803_v63 = vsub.f32 %v715_v3, %v798_v60 }
 0x24f   : > { %v804_v0 = vsub.f32 %v717_v53, %v802_v62  ;;  %v805_v2 = vmul.f32 %v803_v63, %v803_v63 }
 0x251   : > { %v806_v1 = vmul.f32 %v804_v0, %v804_v0 }
 0x253   : > { %837 = vmatprep.subr.mxu1 %v806_v1 }
 0x254   : > { %838 = vmatpush1.msra.mxu1 %v805_v2 }
 0x255   : > { %1385 = vmatmul.mubr.msk.f32.vlgmr.msra.gmra.mxu1 %vm2250_vm7, %v1553_v54  ;;  %vm2309_vm7 = vcmp.lt.s32.totalorder %v1734_v18, 111 }
 0x256   : > { %1100 = vmatprep.mubr.f32.mxu1 %v1546_v12  ;;  %vm2310_vm2 = vmmov %vm2309_vm7 }
 0x315   : > { %v873_v4 = vpop.f32.mrf.mxu1 }
 0x316   : > { %v874_v5 = vadd.f32 1e-06, %v873_v4 }
 0x317   : > { %v875_v7 = vpop.f32.mrf.mxu1 }
 0x318   : > { %1449 = vrsqrt.f32 %v874_v5  ;;  %v876_v13 = vadd.f32 1e-06, %v875_v7 }
 0x31a   : > { %1451 = vrsqrt.f32 %v876_v13 }
 0x325   : > { %v1450_v14 = vpop.eup %1449 }
 0x326   : > { %v883_v16 = vrot.slane %v1450_v14, %v1668_v6 }
 0x327   : > { %v1452_v17 = vpop.eup %1451 }
 0x328   : > { %v887_v20 = vrot.slane %v1452_v17, %v1668_v6  ;;  %v888_v21 = vmul.f32 %v883_v16, %v803_v63 }
 0x32a   : > { %v889_v23 = vmul.f32 %v887_v20, %v804_v0  ;;  %v896_v24 = vmul.f32 %v894_v19, %v888_v21 }
 0x32c   : > { %v897_v25 = vmul.f32 %v894_v19, %v889_v23  ;;  %v904_v26 = vadd.f32 %v902_v22, %v896_v24 }
 0x32e   : > { %v905_v27 = vadd.f32 %v902_v22, %v897_v25  ;;  %v908_v28 = vmul.f32 0.70710677, %v904_v26  ;;  %v906_v37 = vmul.f32 0.5, %v904_v26 }
 0x330   : > { %v909_v29 = vmul.f32 0.70710677, %v905_v27  ;;  %1453 = verf.f32 %v908_v28  ;;  %v907_v41 = vmul.f32 0.5, %v905_v27 }
 0x332   : > { %1455 = verf.f32 %v909_v29 }
 0x33d   : > { %v1454_v32 = vpop.eup %1453 }
 0x33e   : > { %v912_v38 = vadd.f32 1.0, %v1454_v32 }
 0x33f   : > { %v1456_v39 = vpop.eup %1455 }
 0x340   : > { %v913_v44 = vadd.f32 1.0, %v1456_v39  ;;  %v1982_v45 = vmul.f32 %v912_v38, %v906_v37 }
 0x342   : > { %v1984_v48 = vmul.f32 %v913_v44, %v907_v41  ;;  %988 = vst [vmem:[#allocation2 + $0x88] sm:$0xff] %v1982_v45  ;;  %916 = vrot.lane.b32.xlu1 %v1982_v45, %s1545_s18 }
 0x344   : > { %989 = vst [vmem:[#allocation2 + $0x40] sm:$0xff] %v1984_v48  ;;  %918 = vrot.lane.b32.xlu0 %v1984_v48, %s1545_s18 }
 0x346   : > { %922 = vrot.lane.b32.xlu1 %v1982_v45, %s1544_s12 }
 0x348   : > { %924 = vrot.lane.b32.xlu0 %v1984_v48, %s1544_s12 }
 0x34a   : > { %934 = vrot.lane.b32.xlu1 %v1982_v45, %s1548_s21 }
 0x34c   : > { %936 = vrot.lane.b32.xlu0 %v1984_v48, %s1548_s21  ;;  %s1314_s21 = scalar_lea.hbm %s2229_s10, %s1395_s26 }
 0x34e   : > { %940 = vrot.lane.b32.xlu1 %v1982_v45, %s1549_s25 }
 0x350   : > { %942 = vrot.lane.b32.xlu0 %v1984_v48, %s1549_s25 }
 0x352   : > { %952 = vrot.lane.b32.xlu1 %v1982_v45, %s2306_s30 }
 0x354   : > { %954 = vrot.lane.b32.xlu0 %v1984_v48, %s2306_s30 }
 0x356   : > { %958 = vrot.lane.b32.xlu1 %v1982_v45, %s1551_s27 }
 0x358   : > { %960 = vrot.lane.b32.xlu0 %v1984_v48, %s1551_s27  ;;  %s1485_s27 = sshll.u32 %s1554_s17, 4  ;;  %s1486_s27 = int_to_ptr.vmem [resolvable:$false] %s1485_s27 }
 0x35a   : > { %970 = vrot.lane.b32.xlu1 %v1982_v45, %s1547_s20 }
 0x35c   : > { %972 = vrot.lane.b32.xlu0 %v1984_v48, %s1547_s20 }
 0x35e   : > { %976 = vrot.lane.b32.xlu1 %v1982_v45, %s1552_s28 }
 0x360   : > { %978 = vrot.lane.b32.xlu0 %v1984_v48, %s1552_s28  ;;  %s350_s28 = sand.u32 1, %s1533_s14  }
 0x361   : > { %s1379_s11 = sshll.u32 %s350_s28, 4  ;;  %s1302_s25 = scalar_lea.sflag [#allocation4], %s350_s28 }
 0x362   : > { %1276 = vperm.xlu1 %1447, %v1273_v49   ;;  %s352_s29 = scalar_lea.vmem [#allocation3], %s1379_s11  ;;  %s1487_s11 = scalar_lea.vmem %s1486_s27, 512 }
 0x363   : > { %s1316_s30 = sshll.u32 %s352_s29, 4  ;;  %s1317_s30 = int_to_ptr.vmem [resolvable:$true] %s1316_s30 }
 0x364   : > { %1284 = vperm.xlu0 %1446, %v1281_v50   ;;  %s1481_s20 = scalar_lea.vmem %s1317_s30, 256  ;;  %p1488_p0 = scmp.lt.s32.totalorder %s1317_s30, %s1486_s27 }
 0x365   : > { %p1482_p11 = scmp.ne.s32.totalorder %s1317_s30, %s1481_s20  ;;  %p1489_p1 = scmp.lt.s32.totalorder %s1487_s11, %s1481_s20 }
 0x367   : > { %p1483_p12 = pnand %p1482_p11, %p1648_p5  ;;  %p1490_p2 = por %p1489_p1, %p1488_p0 }
 0x369   : > { %p1484_p13 = pneg %p1483_p12 }
 0x36b   : > { %p1491_p3 = pnand %p1490_p2, %p1484_p13 }
 0x3b4   : > { %v917_v51 = vpop.permute.xlu1 %916 }
 0x3b6   : > { %v919_v15 = vpop.permute.xlu0 %918 }
 0x3b7   : > { %v920_v55 = vsel %vm2307_vm3, %v917_v51, %v919_v15  ;;  %v921_v56 = vsel %vm2308_vm1, %v919_v15, %v917_v51  ;;  %vm2313_vm3 = vcmp.lt.s32.totalorder %v1734_v18, 112 }
 0x3b8   : > { %v923_v3 = vpop.permute.xlu1 %922  ;;  %vm2314_vm1 = vmmov %vm2313_vm3 }
 0x3ba   : > { %v925_v53 = vpop.permute.xlu0 %924 }
 0x3bb   : > { %v926_v57 = vsel %vm2309_vm7, %v923_v3, %v925_v53  ;;  %v927_v60 = vsel %vm2310_vm2, %v925_v53, %v923_v3  ;;  %vm2311_vm2 = vcmp.lt.s32.totalorder %v1734_v18, 16 }
 0x3bc   : > { %v2036_v61 = vsel %vm1814_vm4, %v921_v56, %v926_v57  ;;  %v2040_v62 = vsel %vm1818_vm0, %v920_v55, %v927_v60  ;;  %v1008_v63 = vsel %vm1814_vm4, %v926_v57, %v921_v56  ;;  %v1009_v0 = vsel %vm1818_vm0, %v927_v60, %v920_v55  ;;  %v935_v1 = vpop.permute.xlu1 %934  ;;  %vm2312_vm7 = vmmov %vm2311_vm2 }
 0x3bd   : > { %v930_v2 = vsel %vm1758_vm12, %v2036_v61, 0.0  ;;  %v931_v4 = vsel %vm1762_vm13, %v2040_v62, 0.0  ;;  %v1010_v5 = vsel %vm1772_vm15, %v1008_v63, 0.0  ;;  %v1011_v7 = vsel %vm1780_vm5, %v1009_v0, 0.0  ;;  %1465 = vmatprep.subr.msk.mxu1 %vm1780_vm5, %v1009_v0 }
 0x3be   : > { %932 = vst [vmem:[#allocation2] sm:$0xff] %v930_v2  ;;  %933 = vst [vmem:[#allocation2 + $0x38] sm:$0xff] %v931_v4  ;;  %v937_v13 = vpop.permute.xlu0 %936  ;;  %1466 = vmatpush1.msk.msra.mxu1 %vm1772_vm15, %v1008_v63  ;;  %vm2315_vm15 = vnez %v2267_v43  ;;  %vm2316_vm5 = vnez %v2269_v46  ;;  %vm2321_vm12 = vcmp.lt.s32.totalorder %v1734_v18, 113 }
 0x3bf   : > { %1012 = vst [vmem:[#allocation2 + $0x68] sm:$0xff] %v1010_v5  ;;  %1013 = vst [vmem:[#allocation2 + $0x60] sm:$0xff] %v1011_v7  ;;  %v938_v17 = vsel %vm2311_vm2, %v935_v1, %v937_v13  ;;  %v939_v19 = vsel %vm2312_vm7, %v937_v13, %v935_v1  ;;  %vm2317_vm2 = vnez %v2271_v47  ;;  %vm2318_vm7 = vnez %v2273_v52 }
 0x3c0   : > { %v941_v14 = vpop.permute.xlu1 %940  ;;  %vm2322_vm13 = vmmov %vm2321_vm12 }
 0x3c2   : > { %v943_v16 = vpop.permute.xlu0 %942 }
 0x3c3   : > { %v944_v20 = vsel %vm2313_vm3, %v941_v14, %v943_v16  ;;  %v945_v21 = vsel %vm2314_vm1, %v943_v16, %v941_v14  ;;  %vm2319_vm3 = vcmp.lt.s32.totalorder %v1734_v18, 15 }
 0x3c4   : > { %v2070_v42 = vsel %vm1814_vm4, %v939_v19, %v944_v20  ;;  %v2074_v40 = vsel %vm1818_vm0, %v938_v17, %v945_v21  ;;  %v1002_v22 = vsel %vm1814_vm4, %v944_v20, %v939_v19  ;;  %v1003_v23 = vsel %vm1818_vm0, %v945_v21, %v938_v17  ;;  %v953_v24 = vpop.permute.xlu1 %952  ;;  %vm2320_vm1 = vmmov %vm2319_vm3 }
 0x3c5   : > { %v948_v25 = vsel %vm2315_vm15, %v2070_v42, 0.0  ;;  %v949_v26 = vsel %vm2316_vm5, %v2074_v40, 0.0  ;;  %v1004_v27 = vsel %vm2317_vm2, %v1002_v22, 0.0  ;;  %v1005_v28 = vsel %vm2318_vm7, %v1003_v23, 0.0  ;;  %1467 = vmatprep.subr.msk.mxu1 %vm2318_vm7, %v1003_v23 }
 0x3c6   : > { %950 = vst [vmem:[#allocation2 + $0x78] sm:$0xff] %v948_v25  ;;  %951 = vst [vmem:[#allocation2 + $0x58] sm:$0xff] %v949_v26  ;;  %v955_v29 = vpop.permute.xlu0 %954  ;;  %1468 = vmatpush1.msk.msra.mxu1 %vm2317_vm2, %v1002_v22  ;;  %vm2325_vm2 = vcmp.lt.s32.totalorder %v1734_v18, 1 }
 0x3c7   : > { %1006 = vst [vmem:[#allocation2 + $0x30] sm:$0xff] %v1004_v27  ;;  %1007 = vst [vmem:[#allocation2 + $0x18] sm:$0xff] %v1005_v28  ;;  %v956_v38 = vsel %vm2319_vm3, %v953_v24, %v955_v29  ;;  %v957_v39 = vsel %vm2320_vm1, %v955_v29, %v953_v24  ;;  %vm2327_vm3 = vcmp.lt.s32.totalorder %v1734_v18, 127 }
 0x3c8   : > { %v959_v32 = vpop.permute.xlu1 %958  ;;  %vm2326_vm7 = vmmov %vm2325_vm2 }
 0x3c9   : > { %vm2328_vm1 = vmmov %vm2327_vm3 }
 0x3ca   : > { %v961_v37 = vpop.permute.xlu0 %960 }
 0x3cb   : > { %v962_v41 = vsel %vm2321_vm12, %v959_v32, %v961_v37  ;;  %v963_v44 = vsel %vm2322_vm13, %v961_v37, %v959_v32  ;;  %vm2323_vm12 = vnez %v2285_v33  ;;  %vm2324_vm13 = vnez %v2287_v36 }
 0x3cc   : > { %v964_v52 = vsel %vm1814_vm4, %v957_v39, %v962_v41  ;;  %v965_v47 = vsel %vm1818_vm0, %v956_v38, %v963_v44  ;;  %v996_v49 = vsel %vm1814_vm4, %v962_v41, %v957_v39  ;;  %v997_v50 = vsel %vm1818_vm0, %v963_v44, %v956_v38  ;;  %v971_v51 = vpop.permute.xlu1 %970 }
 0x3cd   : > { %v966_v15 = vsel %vm1870_vm11, %v964_v52, 0.0  ;;  %v967_v3 = vsel %vm1874_vm10, %v965_v47, 0.0  ;;  %v998_v53 = vsel %vm2323_vm12, %v996_v49, 0.0  ;;  %v999_v55 = vsel %vm2324_vm13, %v997_v50, 0.0  ;;  %1469 = vmatprep.subr.msk.mxu1 %vm2324_vm13, %v997_v50 }
 0x3ce   : > { %968 = vst [vmem:[#allocation2 + $0x20] sm:$0xff] %v966_v15  ;;  %969 = vst [vmem:[#allocation2 + $0x8] sm:$0xff] %v967_v3  ;;  %v973_v56 = vpop.permute.xlu0 %972  ;;  %1470 = vmatpush1.msk.msra.mxu1 %vm2323_vm12, %v996_v49 }
 0x3cf   : > { %1000 = vst [vmem:[#allocation2 + $0x10] sm:$0xff] %v998_v53  ;;  %1001 = vst [vmem:[#allocation2 + $0x48] sm:$0xff] %v999_v55  ;;  %v974_v63 = vsel %vm2325_vm2, %v971_v51, %v973_v56  ;;  %v975_v0 = vsel %vm2326_vm7, %v973_v56, %v971_v51 }
 0x3d0   : > { %v977_v57 = vpop.permute.xlu1 %976 }
 0x3d2   : > { %v979_v60 = vpop.permute.xlu0 %978 }
 0x3d3   : > { %v980_v1 = vsel %vm2327_vm3, %v977_v57, %v979_v60  ;;  %v981_v2 = vsel %vm2328_vm1, %v979_v60, %v977_v57 }
 0x3d4   : > { %v982_v36 = vsel %vm1814_vm4, %v975_v0, %v980_v1  ;;  %v983_v33 = vsel %vm1818_vm0, %v974_v63, %v981_v2  ;;  %v990_v4 = vsel %vm1814_vm4, %v980_v1, %v975_v0  ;;  %v991_v5 = vsel %vm1818_vm0, %v981_v2, %v974_v63 }
 0x3d5   : > { %v984_v7 = vsel %vm1921_vm14, %v982_v36, 0.0  ;;  %v985_v13 = vsel %vm1925_vm6, %v983_v33, 0.0  ;;  %v992_v18 = vsel %vm1929_vm9, %v990_v4, 0.0  ;;  %v993_v14 = vsel %vm1933_vm8, %v991_v5, 0.0  ;;  %1471 = vmatprep.subr.msk.mxu1 %vm1933_vm8, %v991_v5 }
 0x3d6   : > { %986 = vst [vmem:[#allocation2 + $0x70] sm:$0xff] %v984_v7  ;;  %987 = vst [vmem:[#allocation2 + $0x80] sm:$0xff] %v985_v13  ;;  %1472 = vmatpush1.msk.msra.mxu1 %vm1929_vm9, %v990_v4  ;;  %vm2329_vm4 = vnez %v2261_v35  ;;  %vm2332_vm0 = vcmask 64512  }
 0x3d7   : > { %994 = vst [vmem:[#allocation2 + $0x50] sm:$0xff] %v992_v18  ;;  %995 = vst [vmem:[#allocation2 + $0x28] sm:$0xff] %v993_v14  ;;  %1058 = vmatprep.subr.mxu1 %v1984_v48 }
 0x3d8   : > { %1059 = vmatpush1.msra.mxu1 %v1982_v45 }
 0x3d9   : > { %1473 = vmatprep.subr.msk.mxu1 %vm1925_vm6, %v983_v33 }
 0x3da   : > { %1474 = vmatpush1.msk.msra.mxu1 %vm1921_vm14, %v982_v36  ;;  %vm2333_vm14 = vmmov %vm2332_vm0 }
 0x3db   : > { %1475 = vmatprep.subr.msk.mxu1 %vm1874_vm10, %v965_v47  ;;  %vm2330_vm10 = vnez %v2259_v34 }
 0x3dc   : > { %1476 = vmatpush1.msk.msra.mxu1 %vm1870_vm11, %v964_v52  ;;  %vm2331_vm11 = vcmask 588800  }
 0x3dd   : > { %1477 = vmatprep.subr.msk.mxu1 %vm2316_vm5, %v2074_v40  ;;  %v1277_v20 = vpop.permute.xlu1 %1276 }
 0x3de   : > { %1478 = vmatpush1.msk.msra.mxu1 %vm2315_vm15, %v2070_v42 }
 0x3df   : > { %1479 = vmatprep.subr.msk.mxu1 %vm2329_vm4, %v2040_v62  ;;  %v1285_v40 = vpop.permute.xlu0 %1284 }
 0x3e0   : > { %1480 = vmatpush1.msk.msra.mxu1 %vm2330_vm10, %v2036_v61 }
 0x3e1   : > { %1386 = vmatmul.mubr.msk.f32.vlgmr.msra.gmra.mxu1 %vm2331_vm11, %v1014_v58 }
 0x4a1   : > { %v1102_v46 = vpop.f32.mrf.mxu1 }
 0x4a3   : > { %v1104_v59 = vpop.f32.mrf.mxu1 }
 0x4a4   : > { %1137 = vmatprep.subr.mxu0 %v1104_v59 }
 0x4a5   : > { %1138 = vmatpush1.msra.mxu0 %v1102_v46 }
 0x4a6   : > { %1387 = vmatmul.mubr.msk.f32.vlgmr.msra.gmra.mxu0 %vm2332_vm0, %v1553_v54 }
 0x4a7   : > { %1254 = vmatprep.mubr.f32.mxu0 %v1546_v12 }
 0x566   : > { %v1173_v43 = vpop.f32.mrf.mxu0 }
 0x567   : > { %v1181_v30 = vrot.slane %v1173_v43, %v1668_v6 }
 0x568   : > { %v1175_v35 = vpop.f32.mrf.mxu0 }
 0x569   : > { %v1185_v31 = vrot.slane %v1175_v35, %v1668_v6  ;;  %v1186_v8 = vsub.f32 %v1102_v46, %v1181_v30 }
 0x56b   : > { %v1187_v34 = vsub.f32 %v1104_v59, %v1185_v31  ;;  %v1188_v10 = vmul.f32 %v1186_v8, %v1186_v8 }
 0x56d   : > { %v1189_v9 = vmul.f32 %v1187_v34, %v1187_v34 }
 0x56f   : > { %1220 = vmatprep.subr.mxu0 %v1189_v9 }
 0x570   : > { %1221 = vmatpush1.msra.mxu0 %v1188_v10 }
 0x571   : > { %1388 = vmatmul.mubr.msk.f32.vlgmr.msra.gmra.mxu0 %vm2333_vm14, %v1553_v54 }
 0x631   : > { %v1256_v11 = vpop.f32.mrf.mxu0 }
 0x632   : > { %v1257_v45 = vadd.f32 1e-06, %v1256_v11 }
 0x633   : > { %v1258_v48 = vpop.f32.mrf.mxu0 }
 0x634   : > { %1457 = vrsqrt.f32 %v1257_v45  ;;  %v1259_v12 = vadd.f32 1e-06, %v1258_v48 }
 0x636   : > { %1459 = vrsqrt.f32 %v1259_v12 }
 0x641   : > { %v1458_v61 = vpop.eup %1457 }
 0x642   : > { %v1266_v62 = vrot.slane %v1458_v61, %v1668_v6 }
 0x643   : > { %v1460_v16 = vpop.eup %1459 }
 0x644   : > { %v1270_v17 = vrot.slane %v1460_v16, %v1668_v6  ;;  %v1271_v19 = vmul.f32 %v1266_v62, %v1186_v8 }
 0x646   : > { %v1272_v21 = vmul.f32 %v1270_v17, %v1187_v34  ;;  %v1279_v42 = vmul.f32 %v1277_v20, %v1271_v19 }
 0x648   : > { %v1280_v54 = vmul.f32 %v1277_v20, %v1272_v21  ;;  %v1287_v22 = vadd.f32 %v1285_v40, %v1279_v42 }
 0x64a   : > { %v1288_v23 = vadd.f32 %v1285_v40, %v1280_v54  ;;  %v1291_v24 = vmul.f32 0.70710677, %v1287_v22  ;;  %v1289_v27 = vmul.f32 0.5, %v1287_v22 }
 0x64c   : > { %v1292_v25 = vmul.f32 0.70710677, %v1288_v23  ;;  %1461 = verf.f32 %v1291_v24  ;;  %v1290_v29 = vmul.f32 0.5, %v1288_v23 }
 0x64e   : > { %1463 = verf.f32 %v1292_v25 }
 0x659   : > { %v1462_v26 = vpop.eup %1461 }
 0x65a   : > { %v1295_v28 = vadd.f32 1.0, %v1462_v26 }
 0x65b   : > { %v1464_v6 = vpop.eup %1463 }
 0x65c   : > { %v1296_v32 = vadd.f32 1.0, %v1464_v6  ;;  %v1297_v37 = vmul.f32 %v1295_v28, %v1289_v27 }
 0x65e   : > { %v1298_v38 = vmul.f32 %v1296_v32, %v1290_v29  ;;  %1299 = vst [vmem:[%s352_s29] sm:$0xff] %v1297_v37 }
 0x660   : > { %1300 = vst [vmem:[%s352_s29 + $0x8] sm:$0xff] %v1298_v38 }
 0x661   : > { %1494 = shalt.err (!%p1491_p3)
}
 0x662   : > { %s1495_s0 = scalar_lea.hbm %s1314_s21, 256  ;;  %s1499_s29 = scalar_lea.hbm %s2229_s10, 512 }
 0x663   : > { %p1496_p4 = scmp.ne.s32.totalorder %s1314_s21, %s1495_s0  ;;  %p1500_p9 = scmp.lt.s32.totalorder %s1314_s21, %s2229_s10 }
 0x664   : > { %p1501_p10 = scmp.lt.s32.totalorder %s1499_s29, %s1495_s0 }
 0x665   : > { %p1497_p7 = pnand %p1496_p4, %p1648_p5 }
 0x666   : > { %p1502_p11 = por %p1501_p10, %p1500_p9 }
 0x667   : > { %p1498_p8 = pneg %p1497_p7 }
 0x669   : > { %p1503_p12 = pnand %p1502_p11, %p1498_p8 }
 0x66b   : > { %1506 = shalt.err (!%p1503_p12)
}
 0x66c   : > { %1396 = dma.vmem_to_hbm [thread:$0]  (%p1648_p5), %s1317_s30, 256, %s1314_s21, %s1302_s25  }
 0x66d PF: > { %p1402_p13 = scmp.ge.s32.totalorder %s1541_s16, 2  ;;  %s1328_s20 = sand.u32 1, %s1529_s13  }
 0x66e   : > { %s1329_s17 = scalar_lea.sflag [#allocation4], %s1328_s20 }
 0x66f   : > { %p1399_p0 = pnand %p1402_p13, %p1652_p6 }
 0x671   : > { %p1400_p1 = pneg %p1399_p0 }
 0x673   : > { %1524 = dma.done.wait (%p1400_p1), %s1329_s17, 256  }
 0x674   : > { %1526 = vsyncadd (%p1400_p1), %s1329_s17, 4294967040  ;;  %p20_p2 = scmp.ge.s32.totalorder %s1635_s19, 4   ;;  %s2334_s13 = smov %s1533_s14 }
 0x675   : > { %s2335_s14 = smov %s1537_s15  ;;  %s2336_s15 = smov %s1646_s22 }
 0x676   : > { %s2337_s16 = smov %s1635_s19  ;;  %22 = sbr.rel (!%p20_p2) target bundleno = 5 (0x5), region = 95 }
 0x67b   :  { %1334 = vsyncpa [#allocation4], 1 }
 0x67c   :  { %1336 = vsyncpa [#allocation4 + $0x1], 1 }

</bundles_post_ra>
